<compile_context>
chip_gen: v6e
topology: v6e:2x2x1
jax: 0.10.0
libtpu: 0.0.40
codegen_flags: <defaults>
</compile_context>

<pallas_src>
import math

import jax
import jax.numpy as jnp
from jax import lax
from jax.experimental import pallas as pl
from jax.experimental.pallas import tpu as pltpu


def pipe_kernel(x_ref, w_ref, b_ref, o_ref):
    """One grid step = one micro-batch pushed through ALL partitions.

    The partition loop lives inside the kernel (fully unrolled) so the grid
    overhead is paid once per micro-batch.  The in-flight activation is
    carried in bf16 between stages (the next matmul consumes bf16 anyway);
    the output tile is written once, from the pre-rounding f32 result of the
    last stage.
    """
    num_partitions = w_ref.shape[0]
    compute_dtype = w_ref.dtype  # bf16

    def stage(p, h):
        y = jnp.dot(h, w_ref[p], preferred_element_type=jnp.float32) + b_ref[p]
        return jnp.maximum(y, 0.0).astype(compute_dtype)

    h0 = x_ref[...].astype(compute_dtype)
    h = lax.fori_loop(0, num_partitions - 1, stage, h0, unroll=True)

    # Last partition: keep the f32 result live for the single output store.
    y = (jnp.dot(h, w_ref[num_partitions - 1], preferred_element_type=jnp.float32)
         + b_ref[num_partitions - 1])
    o_ref[...] = jnp.maximum(y, 0.0).astype(o_ref.dtype)


def pipe_forward(x, weights, biases, split_size):
    """Pipe.forward: chunk -> pipeline through all partitions -> concat."""
    B, H = x.shape
    P, h_in, h_out = weights.shape
    assert h_in == H and h_out == H
    assert biases.shape == (P, 1, H)
    # TODO(synk): torch Pipe allows a ragged last micro-batch (ceil split);
    # supporting that here needs masking / pl.BoundedSlice on the last tile.
    assert B % split_size == 0, "equal-sized micro-batches required"
    num_microbatches = B // split_size

    out_dtype = x.dtype  # callers may pass bf16 x to halve x/out HBM traffic

    # --- VMEM accounting: double-buffered x/out tiles + single-buffered
    # weight/bias stacks + in-kernel activation temporaries. ---
    itm = lambda dt: jnp.dtype(dt).itemsize
    est_vmem = (
        2 * split_size * H * itm(x.dtype)        # input micro-batch tile (x2 buffers)
        + 2 * split_size * H * itm(out_dtype)    # output micro-batch tile (x2 buffers)
        + 1 * P * H * H * itm(weights.dtype)     # weight stack, Buffered(1) resident
        + 1 * P * 8 * H * itm(biases.dtype)      # bias stack (sublane-padded to 8)
        + 2 * split_size * H * 4                 # f32/bf16 activation temporaries
    )
    VMEM_BUDGET = 48 * 1024 * 1024  # conservative: v7x has only 64 MiB physical VMEM/TC
    # TODO(synk): when the resident weight stack exceeds the budget (large H*P,
    # especially on v7x), stream per-partition weights via a (1, H, H) spec on
    # an inner grid axis instead of keeping the whole stack resident.
    assert est_vmem <= VMEM_BUDGET, f"resident tiles need {est_vmem} B of VMEM"
    vmem_limit = int(min(max(2 * est_vmem, 32 * 1024 * 1024), 64 * 1024 * 1024))

    grid_spec = pltpu.PrefetchScalarGridSpec(
        num_scalar_prefetch=0,
        grid=(num_microbatches,),
        in_specs=[
            # one micro-batch of the input per grid step
            pl.BlockSpec((split_size, H), lambda i: (i, 0)),
            # full weight / bias stacks: constant index_map -> fetched once and
            # kept VMEM-resident; Buffered(1) -> no wasted second buffer.
            pl.BlockSpec((P, H, H), lambda i: (0, 0, 0),
                         pipeline_mode=pl.Buffered(1)),
            pl.BlockSpec((P, 1, H), lambda i: (0, 0, 0),
                         pipeline_mode=pl.Buffered(1)),
        ],
        out_specs=pl.BlockSpec((split_size, H), lambda i: (i, 0)),
    )

    # TODO(synk): multi-device placement ("result on the last device") and the
    # worker-thread queues of torch Pipe have no single-core Pallas
    # equivalent; the clock-cycle schedule collapses to this sequential
    # micro-batch grid (shardable across v7x's two TensorCores).
    return pl.pallas_call(
        pipe_kernel,
        out_shape=jax.ShapeDtypeStruct((B, H), out_dtype),
        grid_spec=grid_spec,
        compiler_params=pltpu.CompilerParams(
            dimension_semantics=("parallel",),
            vmem_limit_bytes=vmem_limit,
        ),
    )(x, weights, biases)


def reference_forward(x, weights, biases):
    """Pure-JAX reference: sequential application of all partitions."""
    h = x.astype(jnp.float32)
    for p in range(weights.shape[0]):
        y = jnp.dot(h.astype(weights.dtype), weights[p],
                    preferred_element_type=jnp.float32) + biases[p, 0]
        h = jnp.maximum(y, 0.0)
    return h


if __name__ == "__main__":
    # Micro-batch tiling (per perf review): on one TensorCore larger tiles are
    # strictly better, so take the largest split_size that keeps tiles
    # VMEM-resident; keep the micro-batch count even so the "parallel" grid
    # axis shards cleanly across v7x's two TensorCores.
    B, H, P = 512, 256, 3
    split_size = B // 2          # 2 micro-batches of 256 rows (MXU-friendly)

    key = jax.random.PRNGKey(0)
    kx, kw, kb = jax.random.split(key, 3)

    x = jax.random.normal(kx, (B, H), dtype=jnp.float32)
    # Deterministic "nn.Linear"-style init; bf16 storage (2x MXU throughput,
    # half the HBM/VMEM bytes), f32 accumulation inside the kernel.
    weights = (jax.random.normal(kw, (P, H, H), dtype=jnp.float32)
               * (1.0 / math.sqrt(H))).astype(jnp.bfloat16)
    biases = jax.random.normal(kb, (P, 1, H), dtype=jnp.float32) * 0.01

    out = jax.block_until_ready(pipe_forward(x, weights, biases, split_size))
    ref = reference_forward(x, weights, biases)

    assert out.shape == (B, H) and out.dtype == x.dtype
    assert jnp.allclose(out, ref, atol=1e-3, rtol=1e-3), "mismatch vs reference"

    print("KERNEL_OK")
</pallas_src>

<mosaic_0001>
module attributes {stable_mosaic.version = 11 : i64} {
  func.func @pipe_kernel(%arg0: i32, %arg1: memref<256x256xf32, #tpu.memory_space<vmem>>, %arg2: memref<3x256x256xbf16, #tpu.memory_space<vmem>>, %arg3: memref<3x1x256xf32, #tpu.memory_space<vmem>>, %arg4: memref<256x256xf32, #tpu.memory_space<vmem>>) attributes {dimension_semantics = [#tpu.dimension_semantics<parallel>], iteration_bounds = array<i64: 2>, scalar_prefetch = 0 : i64, scratch_operands = 0 : i64, tpu.core_type = #tpu.core_type<tc>, window_params = [{transform_indices = @transform_0, window_bounds = array<i64: 256, 256>}, {pipeline_mode = #tpu.pipeline_mode<synchronous>, transform_indices = @transform_1, window_bounds = array<i64: 3, 256, 256>}, {pipeline_mode = #tpu.pipeline_mode<synchronous>, transform_indices = @transform_2, window_bounds = array<i64: 3, 1, 256>}, {transform_indices = @transform_3, window_bounds = array<i64: 256, 256>}]} {
    %c0 = arith.constant 0 : index
    %c0_0 = arith.constant 0 : index
    %0 = vector.load %arg1[%c0, %c0_0] : memref<256x256xf32, #tpu.memory_space<vmem>>, vector<256x256xf32>
    %1 = arith.truncf %0 : vector<256x256xf32> to vector<256x256xbf16>
    %c0_i32 = arith.constant 0 : i32
    %2 = arith.index_cast %c0_i32 : i32 to index
    %c0_1 = arith.constant 0 : index
    %c0_2 = arith.constant 0 : index
    %3 = vector.load %arg2[%2, %c0_1, %c0_2] : memref<3x256x256xbf16, #tpu.memory_space<vmem>>, vector<1x256x256xbf16>
    %4 = vector.shape_cast %3 : vector<1x256x256xbf16> to vector<256x256xbf16>
    %cst = arith.constant dense<0.000000e+00> : vector<256x256xf32>
    %5 = tpu.matmul %1, %4, %cst {dimension_numbers = #tpu.dot_dimension_numbers<[1], [0], [0], [1], [0, 0, 1, 1], [], []>} : vector<256x256xbf16>, vector<256x256xbf16>, vector<256x256xf32> -> vector<256x256xf32>
    %6 = arith.index_cast %c0_i32 : i32 to index
    %c0_3 = arith.constant 0 : index
    %c0_4 = arith.constant 0 : index
    %7 = vector.load %arg3[%6, %c0_3, %c0_4] : memref<3x1x256xf32, #tpu.memory_space<vmem>>, vector<1x1x256xf32>
    %8 = vector.shape_cast %7 : vector<1x1x256xf32> to vector<1x256xf32>
    %9 = vector.broadcast %8 : vector<1x256xf32> to vector<256x256xf32>
    %10 = arith.addf %5, %9 : vector<256x256xf32>
    %cst_5 = arith.constant 0.000000e+00 : f32
    %11 = vector.broadcast %cst_5 : f32 to vector<256x256xf32>
    %12 = arith.maximumf %10, %11 : vector<256x256xf32>
    %13 = arith.truncf %12 : vector<256x256xf32> to vector<256x256xbf16>
    %c1_i32 = arith.constant 1 : i32
    %14 = arith.index_cast %c1_i32 : i32 to index
    %c0_6 = arith.constant 0 : index
    %c0_7 = arith.constant 0 : index
    %15 = vector.load %arg2[%14, %c0_6, %c0_7] : memref<3x256x256xbf16, #tpu.memory_space<vmem>>, vector<1x256x256xbf16>
    %16 = vector.shape_cast %15 : vector<1x256x256xbf16> to vector<256x256xbf16>
    %cst_8 = arith.constant dense<0.000000e+00> : vector<256x256xf32>
    %17 = tpu.matmul %13, %16, %cst_8 {dimension_numbers = #tpu.dot_dimension_numbers<[1], [0], [0], [1], [0, 0, 1, 1], [], []>} : vector<256x256xbf16>, vector<256x256xbf16>, vector<256x256xf32> -> vector<256x256xf32>
    %18 = arith.index_cast %c1_i32 : i32 to index
    %c0_9 = arith.constant 0 : index
    %c0_10 = arith.constant 0 : index
    %19 = vector.load %arg3[%18, %c0_9, %c0_10] : memref<3x1x256xf32, #tpu.memory_space<vmem>>, vector<1x1x256xf32>
    %20 = vector.shape_cast %19 : vector<1x1x256xf32> to vector<1x256xf32>
    %21 = vector.broadcast %20 : vector<1x256xf32> to vector<256x256xf32>
    %22 = arith.addf %17, %21 : vector<256x256xf32>
    %cst_11 = arith.constant 0.000000e+00 : f32
    %23 = vector.broadcast %cst_11 : f32 to vector<256x256xf32>
    %24 = arith.maximumf %22, %23 : vector<256x256xf32>
    %25 = arith.truncf %24 : vector<256x256xf32> to vector<256x256xbf16>
    %c2_i32 = arith.constant 2 : i32
    %c2 = arith.constant 2 : index
    %c0_12 = arith.constant 0 : index
    %c0_13 = arith.constant 0 : index
    %26 = vector.load %arg2[%c2, %c0_12, %c0_13] : memref<3x256x256xbf16, #tpu.memory_space<vmem>>, vector<1x256x256xbf16>
    %27 = vector.shape_cast %26 : vector<1x256x256xbf16> to vector<256x256xbf16>
    %cst_14 = arith.constant dense<0.000000e+00> : vector<256x256xf32>
    %28 = tpu.matmul %25, %27, %cst_14 {dimension_numbers = #tpu.dot_dimension_numbers<[1], [0], [0], [1], [0, 0, 1, 1], [], []>} : vector<256x256xbf16>, vector<256x256xbf16>, vector<256x256xf32> -> vector<256x256xf32>
    %c2_15 = arith.constant 2 : index
    %c0_16 = arith.constant 0 : index
    %c0_17 = arith.constant 0 : index
    %29 = vector.load %arg3[%c2_15, %c0_16, %c0_17] : memref<3x1x256xf32, #tpu.memory_space<vmem>>, vector<1x1x256xf32>
    %30 = vector.shape_cast %29 : vector<1x1x256xf32> to vector<1x256xf32>
    %31 = vector.broadcast %30 : vector<1x256xf32> to vector<256x256xf32>
    %32 = arith.addf %28, %31 : vector<256x256xf32>
    %cst_18 = arith.constant 0.000000e+00 : f32
    %33 = vector.broadcast %cst_18 : f32 to vector<256x256xf32>
    %34 = arith.maximumf %32, %33 : vector<256x256xf32>
    %c0_19 = arith.constant 0 : index
    %c0_20 = arith.constant 0 : index
    %35 = vector.load %arg4[%c0_19, %c0_20] : memref<256x256xf32, #tpu.memory_space<vmem>>, vector<256x256xf32>
    tpu.vector_store %arg4[%c0_19, %c0_20], %34 {strides = array<i32>} : memref<256x256xf32, #tpu.memory_space<vmem>>, vector<256x256xf32>,
    return
  }
  func.func @transform_0(%arg0: i32) -> (i32, i32) {
    %c0_i32 = arith.constant 0 : i32
    %c0_i32_0 = arith.constant 0 : i32
    return %arg0, %c0_i32 : i32, i32
  }
  func.func @transform_1(%arg0: i32) -> (i32, i32, i32) {
    %c0_i32 = arith.constant 0 : i32
    %c0_i32_0 = arith.constant 0 : i32
    %c0_i32_1 = arith.constant 0 : i32
    %c0_i32_2 = arith.constant 0 : i32
    return %c0_i32, %c0_i32_0, %c0_i32_1 : i32, i32, i32
  }
  func.func @transform_2(%arg0: i32) -> (i32, i32, i32) {
    %c0_i32 = arith.constant 0 : i32
    %c0_i32_0 = arith.constant 0 : i32
    %c0_i32_1 = arith.constant 0 : i32
    %c0_i32_2 = arith.constant 0 : i32
    return %c0_i32, %c0_i32_0, %c0_i32_1 : i32, i32, i32
  }
  func.func @transform_3(%arg0: i32) -> (i32, i32) {
    %c0_i32 = arith.constant 0 : i32
    %c0_i32_0 = arith.constant 0 : i32
    return %arg0, %c0_i32 : i32, i32
  }
}

</mosaic_0001>

<bundles_post_ra>
// kernel: tpu_custom_call.1
= control target key start
LH: loop header
LB: loop body
LE: loop exit
PB: predicated region body
PF: predicated region fallthrough
CT: control target
= control target key end

     0   :  { %8 = vsyncpa [#allocation3], 0  ;;  %s3094_s0 = inlined_call_operand.hbm [shape: f32[512,256], index: 0, kind: input, shape index: {}]   ;;  %s3095_s1 = inlined_call_operand.hbm [shape: bf16[3,256,256], index: 1, kind: input, shape index: {}]   ;;  %s3096_s2 = inlined_call_operand.hbm [shape: f32[3,1,256], index: 2, kind: input, shape index: {}]   ;;  %s3097_s3 = inlined_call_operand.hbm [shape: f32[512,256], index: 3, kind: output, shape index: {}]  }
   0x1   :  { %10 = vsyncpa [#allocation3 + $0x1], 0 }
   0x2   :  { %11 = vsyncpa [#allocation6], 0 }
   0x3   :  { %12 = vsyncpa [#allocation4], 0 }
   0x4   :  { %14 = vsyncpa [#allocation4 + $0x1], 0  ;;  %s2492_s12 = smov 0   ;;  %s2494_s13 = smov 0  }
   0x5   :  { %s2496_s14 = smov 0   ;;  %s2498_s15 = smov 0  }
   0x6 LB: > { %s2513_s16 = sadd.s32 4294967295, %s2458_s15   ;;  %s1939_s17 = sadd.s32 4294967294, %s2458_s15   ;;  %s2458_s15 = sphi %s2498_s15, %s3119_s15   ;;  %s2454_s14 = sphi %s2496_s14, %s3118_s14   ;;  %s2450_s13 = sphi %s2494_s13, %s3117_s13   ;;  %s2446_s12 = sphi %s2492_s12, %s3116_s12  }
   0x7   : > { %p40_p0 = scmp.ne.s32.totalorder %s2450_s13, %s2446_s12  ;;  %p3098_p1 = scmp.eq.s32.totalorder %s2513_s16, 0 }
   0x8   : > { %p112_p3 = scmp.eq.s32.totalorder %s1939_s17, 1  ;;  %p1940_p5 = scmp.ge.s32.totalorder %s2458_s15, 1 }
   0x9   : > { %p2522_p4 = por %p3098_p1, %p40_p0  ;;  %p119_p7 = scmp.lt.s32.totalorder %s2458_s15, 3 }
   0xa   : > { %p2527_p6 = por %p112_p3, %p40_p0  ;;  %s2460_s21 = smov [#allocation5]  }
   0xb   : > { %s3102_s18 = scalar_select %p2522_p4, 1, 0 }
   0xc   : > { %s3103_s19 = scalar_select %p2527_p6, 1, 0 }
   0xd   : > { %p2532_p8 = pnand %p1940_p5, %p119_p7  ;;  %s131_s22 = sshll.u32 %s2460_s21, 4  ;;  %s132_s22 = int_to_ptr.vmem [resolvable:$true] %s131_s22 }
   0xe   : > { %s2461_s24 = smov [#allocation7]   ;;  %s2321_s26 = scalar_lea.vmem %s132_s22, 12288 }
   0xf   : > { %s3104_s20 = scalar_select %p2532_p8, 1, 0 }
  0x10   : > { %p2103_p9 = pneg %p2532_p8  ;;  %s144_s25 = sshll.u32 %s2461_s24, 4  ;;  %s145_s25 = int_to_ptr.vmem [resolvable:$true] %s144_s25 }
  0x11   : > { %p2322_p13 = scmp.ne.s32.totalorder %s132_s22, %s2321_s26  ;;  %p2329_p5 = scmp.lt.s32.totalorder %s132_s22, %s132_s22 }
  0x12   : > { %p2541_p11 = pnand %p2103_p9, %p3098_p1  ;;  %p2330_p7 = scmp.lt.s32.totalorder %s2321_s26, %s2321_s26 }
  0x14   : > { %p2312_p12 = pneg %p2541_p11  ;;  %p2331_p10 = por %p2330_p7, %p2329_p5 }
  0x16   : > { %p2324_p0 = pnand %p2322_p13, %p2312_p12 }
  0x18   : > { %p2325_p3 = pneg %p2324_p0 }
  0x1a   : > { %p2332_p9 = pnand %p2331_p10, %p2325_p3 }
  0x1c   : > { %2335 = shalt.err (!%p2332_p9)
}
  0x1d   : > { %s2462_s27 = smov 128   ;;  %s2463_s28 = smov 8  }
  0x1e   : > { %2106 = dma.hbm_to_vmem [thread:$0]  (!%p2541_p11), %s3095_s1, 12288, %s132_s22, [#allocation6], %s2462_s27, %s2462_s27, %s2463_s28  }
  0x1f   : > { %s2347_s4 = scalar_lea.vmem %s145_s25, 96  ;;  %p2355_p2 = scmp.lt.s32.totalorder %s145_s25, %s145_s25 }
  0x20   : > { %p2348_p1 = scmp.ne.s32.totalorder %s145_s25, %s2347_s4  ;;  %p2356_p6 = scmp.lt.s32.totalorder %s2347_s4, %s2347_s4 }
  0x22   : > { %p2350_p13 = pnand %p2348_p1, %p2312_p12  ;;  %p2357_p5 = por %p2356_p6, %p2355_p2 }
  0x24   : > { %p2351_p0 = pneg %p2350_p13 }
  0x26   : > { %p2358_p10 = pnand %p2357_p5, %p2351_p0 }
  0x28   : > { %2361 = shalt.err (!%p2358_p10)
}
  0x29   : > { %s2464_s5 = smov 32   ;;  %s2465_s6 = smov 2  }
  0x2a   : > { %2109 = dma.hbm_to_vmem [thread:$0]  (!%p2541_p11), %s3096_s2, 96, %s145_s25, [#allocation6], %s2464_s5, %s2464_s5, %s2465_s6  }
  0x2b   : > { %s2564_s9 = sadd.s32 1, %s2458_s15   ;;  %s27_s11 = sadd.s32 1, %s2454_s14 }
  0x2c   : > { %s24_s10 = ssub.s32 %s2458_s15, %s2564_s9  ;;  %p34_p2 = scmp.ne.s32.totalorder %s2454_s14, %s2450_s13 }
  0x2d   : > { %p25_p1 = scmp.eq.s32.totalorder %s24_s10, 0  ;;  %p35_p6 = scmp.eq.s32.totalorder %s2458_s15, 0 }
  0x2e   : > { %p3106_p3 = scmp.eq.s32.totalorder %s2513_s16, 1  ;;  %p2120_p9 = scmp.lt.s32.totalorder %s2458_s15, 2 }
  0x2f   : > { %s2573_s17 = scalar_select %p25_p1, %s2454_s14, %s27_s11  }
  0x30   : > { %p36_p12 = por %p35_p6, %p34_p2  ;;  %p2577_p7 = por %p3106_p3, %p34_p2 }
  0x31   : > { %s158_s22 = sand.u32 1, %s2454_s14   ;;  %s2056_s24 = sshll.u32 %s2458_s15, 13 }
  0x32   : > { %s3107_s21 = scalar_select %p2577_p7, 1, 0 }
  0x33   : > { %s1944_s23 = sshll.u32 %s158_s22, 9  ;;  %s2587_s27 = scalar_lea.hbm %s3094_s0, %s2056_s24 }
  0x34   : > { %s162_s28 = scalar_lea.vmem [#allocation2], %s1944_s23  ;;  %p2591_p11 = pnand %p2120_p9, %p36_p12 }
  0x35   : > { %s170_s29 = sshll.u32 %s162_s28, 4  ;;  %s2595_s4 = scalar_lea.sflag [#allocation3], %s158_s22  ;;  %s2589_s29 = int_to_ptr.vmem [resolvable:$true] %s170_s29 }
  0x36   : > { %s2362_s5 = scalar_lea.hbm %s2587_s27, 8192  ;;  %p2364_p0 = pneg %p2591_p11 }
  0x37   : > { %p2363_p13 = scmp.ne.s32.totalorder %s2587_s27, %s2362_s5  ;;  %s2367_s8 = scalar_lea.hbm %s3094_s0, 16384 }
  0x38   : > { %p2368_p1 = scmp.lt.s32.totalorder %s2587_s27, %s3094_s0  ;;  %p2369_p2 = scmp.lt.s32.totalorder %s2367_s8, %s2362_s5 }
  0x39   : > { %p2365_p5 = pnand %p2364_p0, %p2363_p13 }
  0x3a   : > { %p2370_p6 = por %p2369_p2, %p2368_p1 }
  0x3b   : > { %p2366_p10 = pneg %p2365_p5 }
  0x3d   : > { %p2371_p12 = pnand %p2370_p6, %p2366_p10 }
  0x3f   : > { %2374 = shalt.err (!%p2371_p12)
}
  0x40   : > { %s2375_s22 = scalar_lea.vmem %s2589_s29, 8192  ;;  %s2466_s23 = smov [#allocation2]  }
  0x41   : > { %p2376_p3 = scmp.ne.s32.totalorder %s2589_s29, %s2375_s22  ;;  %s2380_s24 = sshll.u32 %s2466_s23, 4  ;;  %s2381_s24 = int_to_ptr.vmem [resolvable:$false] %s2380_s24 }
  0x42   : > { %s2382_s25 = scalar_lea.vmem %s2381_s24, 16384  ;;  %p2383_p5 = scmp.lt.s32.totalorder %s2589_s29, %s2381_s24 }
  0x43   : > { %p2378_p9 = pnand %p2376_p3, %p2364_p0  ;;  %p2384_p7 = scmp.lt.s32.totalorder %s2382_s25, %s2375_s22 }
  0x45   : > { %p2379_p13 = pneg %p2378_p9  ;;  %p2385_p4 = por %p2384_p7, %p2383_p5 }
  0x47   : > { %p2386_p8 = pnand %p2385_p4, %p2379_p13 }
  0x49   : > { %2389 = shalt.err (!%p2386_p8)
}
  0x4a   : > { %s2467_s26 = smov 256   ;;  %s2468_s28 = smov 16  }
  0x4b   : > { %2113 = dma.hbm_to_vmem [thread:$0]  (!%p2591_p11), %s2587_s27, 8192, %s2589_s29, %s2595_s4, %s2467_s26, %s2467_s26, %s2468_s28  }
  0x4c   : > { %p3109_p0 = scmp.ne.s32.totalorder %s3104_s20, 0 }
  0x4d   : > { %s2619_s5 = sand.u32 (!%p3109_p0), 1, %s2450_s13   ;;  %p3110_p4 = scmp.ne.s32.totalorder (!%p3109_p0), %s3102_s18, 0 }
  0x4e   : > { %182 = sbr.rel (%p3109_p0) target bundleno = 901 (0x385), region = 32  ;;  %s1949_s6 = sshll.u32 (!%p3109_p0), %s2619_s5, 9 }
  0x4f   : > { %s185_s7 = scalar_lea.sflag (!%p3109_p0), [#allocation3], %s2619_s5  ;;  %s2625_s8 = scalar_lea.vmem (!%p3109_p0), [#allocation2], %s1949_s6 }
  0x53   : > { %2433 = dma.done.wait (%p3110_p4), %s185_s7, 8192  }
  0x54   : > { %2435 = vsyncadd (%p3110_p4), %s185_s7, 4294959104  ;;  %p3111_p8 = scmp.eq.s32.totalorder %s2513_s16, 0 }
  0x56   : > { %2437 = dma.done.wait (%p3111_p8), [#allocation6], 12384   ;;  %p3112_p7 = pmov %p3111_p8 }
  0x57   : > { %v2166_v0 = vld [vmem:[#allocation5 + $0x74] ss:$8 sps:$4 sm:$0xff]   ;;  %v2168_v1 = vld [vmem:[#allocation5 + $0x70] ss:$8 sps:$4 sm:$0xff]   ;;  %v2169_v2 = vld [vmem:[#allocation5 + $0x64] ss:$8 sps:$4 sm:$0xff]  }
  0x58   : > { %2439 = vsyncadd (%p3112_p7), [#allocation6], 4294954912  ;;  %521 = vmatprep.subr.bf16.mxu0 %v2166_v0  ;;  %2059 = vmatprep.subr.bf16.mxu1 %v2166_v0  ;;  %v2171_v3 = vld [vmem:[#allocation5 + $0x60] ss:$8 sps:$4 sm:$0xff]   ;;  %v2172_v4 = vld [vmem:[#allocation5 + $0x54] ss:$8 sps:$4 sm:$0xff]  }
  0x59   : > { %522 = vmatpush1.bf16.msra.mxu0 %v2168_v1  ;;  %2075 = vmatpush1.bf16.msra.mxu1 %v2168_v1  ;;  %v2174_v5 = vld [vmem:[#allocation5 + $0x50] ss:$8 sps:$4 sm:$0xff]   ;;  %v2175_v6 = vld [vmem:[#allocation5 + $0x44] ss:$8 sps:$4 sm:$0xff]   ;;  %v2177_v7 = vld [vmem:[#allocation5 + $0x40] ss:$8 sps:$4 sm:$0xff]  }
  0x5a   : > { %523 = vmatprep.subr.bf16.mxu0 %v2169_v2  ;;  %2060 = vmatprep.subr.bf16.mxu1 %v2169_v2  ;;  %v2178_v8 = vld [vmem:[#allocation5 + $0x34] ss:$8 sps:$4 sm:$0xff]   ;;  %v2180_v9 = vld [vmem:[#allocation5 + $0x30] ss:$8 sps:$4 sm:$0xff]   ;;  %v2181_v10 = vld [vmem:[#allocation5 + $0x24] ss:$8 sps:$4 sm:$0xff]  }
  0x5b   : > { %v2183_v11 = vld [vmem:[#allocation5 + $0x20] ss:$8 sps:$4 sm:$0xff]   ;;  %v2184_v12 = vld [vmem:[#allocation5 + $0x14] ss:$8 sps:$4 sm:$0xff]   ;;  %v2186_v16 = vld [vmem:[#allocation5 + $0x10] ss:$8 sps:$4 sm:$0xff]  }
  0x5c   : > { %v222_v13 = vld [vmem:[%s2625_s8 + $0x8] sm:$0xff]  ;;  %v224_v14 = vld [vmem:[%s2625_s8 + $0x18] sm:$0xff]  ;;  %v221_v38 = vld [vmem:[%s2625_s8] sm:$0xff]  ;;  %s2916_s18 = scalar_lea.vmem [#allocation8], %s1949_s6  ;;  %s2058_s20 = sshll.u32 %s2513_s16, 13 }
  0x5d   : > { %524 = vmatpush1.bf16.msra.mxu0 %v2171_v3  ;;  %2076 = vmatpush1.bf16.msra.mxu1 %v2171_v3  ;;  %v286_v15 = vpack.c.bf16 %v224_v14, %v222_v13  ;;  %v2187_v17 = vld [vmem:[#allocation5 + $0x4] ss:$8 sps:$4 sm:$0xff]   ;;  %v2189_v18 = vld [vmem:[#allocation5] ss:$8 sps:$4 sm:$0xff]   ;;  %v2190_v19 = vld [vmem:[#allocation5 + $0xf4] ss:$8 sps:$4 sm:$0xff]   ;;  %s3047_s4 = scalar_lea.hbm %s3097_s3, %s2058_s20 }
  0x5e   : > { %525 = vmatprep.subr.bf16.mxu0 %v2172_v4  ;;  %2061 = vmatprep.subr.bf16.mxu1 %v2172_v4  ;;  %v2192_v20 = vld [vmem:[#allocation5 + $0xf0] ss:$8 sps:$4 sm:$0xff]   ;;  %v2193_v21 = vld [vmem:[#allocation5 + $0xe4] ss:$8 sps:$4 sm:$0xff]   ;;  %v2195_v25 = vld [vmem:[#allocation5 + $0xe0] ss:$8 sps:$4 sm:$0xff]  }
  0x5f   : > { %553 = vmatprep.mubr.bf16.mxu0 %v286_v15  ;;  %v254_v22 = vld [vmem:[%s2625_s8 + $0x108] sm:$0xff]  ;;  %v256_v23 = vld [vmem:[%s2625_s8 + $0x118] sm:$0xff]  ;;  %v223_v39 = vld [vmem:[%s2625_s8 + $0x10] sm:$0xff]  ;;  %s1847_s27 = sshll.u32 %s2916_s18, 4  ;;  %s1833_s16 = scalar_lea.sflag [#allocation4], %s2619_s5  ;;  %s3049_s27 = int_to_ptr.vmem [resolvable:$true] %s1847_s27 }
  0x60   : > { %v302_v24 = vpack.c.bf16 %v256_v23, %v254_v22  ;;  %v2196_v26 = vld [vmem:[#allocation5 + $0xd4] ss:$8 sps:$4 sm:$0xff]   ;;  %v2198_v27 = vld [vmem:[#allocation5 + $0xd0] ss:$8 sps:$4 sm:$0xff]   ;;  %v2199_v28 = vld [vmem:[#allocation5 + $0xc4] ss:$8 sps:$4 sm:$0xff]   ;;  %v285_v47 = vpack.c.bf16 %v223_v39, %v221_v38 }
  0x61   : > { %526 = vmatpush1.bf16.msra.mxu0 %v2174_v5  ;;  %2077 = vmatpush1.bf16.msra.mxu1 %v2174_v5  ;;  %v2201_v29 = vld [vmem:[#allocation5 + $0xc0] ss:$8 sps:$4 sm:$0xff]   ;;  %v2202_v30 = vld [vmem:[#allocation5 + $0xb4] ss:$8 sps:$4 sm:$0xff]   ;;  %v2204_v31 = vld [vmem:[#allocation5 + $0xb0] ss:$8 sps:$4 sm:$0xff]  }
  0x62   : > { %527 = vmatprep.subr.bf16.mxu0 %v2175_v6  ;;  %2062 = vmatprep.subr.bf16.mxu1 %v2175_v6  ;;  %v2205_v32 = vld [vmem:[#allocation5 + $0xa4] ss:$8 sps:$4 sm:$0xff]   ;;  %v2207_v33 = vld [vmem:[#allocation5 + $0xa0] ss:$8 sps:$4 sm:$0xff]   ;;  %v2208_v34 = vld [vmem:[#allocation5 + $0x94] ss:$8 sps:$4 sm:$0xff]  }
  0x63   : > { %633 = vmatprep.mubr.bf16.mxu1 %v302_v24  ;;  %v2210_v35 = vld [vmem:[#allocation5 + $0x90] ss:$8 sps:$4 sm:$0xff]   ;;  %v2211_v36 = vld [vmem:[#allocation5 + $0x84] ss:$8 sps:$4 sm:$0xff]   ;;  %v2213_v37 = vld [vmem:[#allocation5 + $0x80] ss:$8 sps:$4 sm:$0xff]  }
  0x64   : > { %v226_v40 = vld [vmem:[%s2625_s8 + $0x28] sm:$0xff]  ;;  %v228_v41 = vld [vmem:[%s2625_s8 + $0x38] sm:$0xff]  ;;  %v253_v42 = vld [vmem:[%s2625_s8 + $0x100] sm:$0xff]  ;;  %s2390_s10 = scalar_lea.vmem %s3049_s27, 8192  ;;  %p3113_p10 = scmp.ne.s32.totalorder %s3107_s21, 0 }
  0x65   : > { %528 = vmatpush1.bf16.msra.mxu0 %v2177_v7  ;;  %2078 = vmatpush1.bf16.msra.mxu1 %v2177_v7  ;;  %v255_v43 = vld [vmem:[%s2625_s8 + $0x110] sm:$0xff]  ;;  %v258_v44 = vld [vmem:[%s2625_s8 + $0x128] sm:$0xff]  ;;  %v260_v45 = vld [vmem:[%s2625_s8 + $0x138] sm:$0xff]  ;;  %v288_v50 = vpack.c.bf16 %v228_v41, %v226_v40  ;;  %p2391_p11 = scmp.ne.s32.totalorder %s3049_s27, %s2390_s10  ;;  %s2469_s11 = smov [#allocation8]  }
  0x66   : > { %529 = vmatprep.subr.bf16.mxu0 %v2178_v8  ;;  %2063 = vmatprep.subr.bf16.mxu1 %v2178_v8  ;;  %v2216_v46 = vld [vmem:[#allocation5 + $0x174] ss:$8 sps:$4 sm:$0xff]   ;;  %v301_v48 = vpack.c.bf16 %v255_v43, %v253_v42  ;;  %v2214_v49 = vld [vmem:[#allocation5 + $0x170] ss:$8 sps:$4 sm:$0xff]   ;;  %v304_v51 = vpack.c.bf16 %v260_v45, %v258_v44  ;;  %v2219_v52 = vld [vmem:[#allocation5 + $0x164] ss:$8 sps:$4 sm:$0xff]  }
  0x67   : > { %v225_v53 = vld [vmem:[%s2625_s8 + $0x20] sm:$0xff]  ;;  %v227_v54 = vld [vmem:[%s2625_s8 + $0x30] sm:$0xff]  ;;  %v230_v57 = vld [vmem:[%s2625_s8 + $0x48] sm:$0xff]  ;;  %p2392_p1 = pnand %p2391_p11, %p3113_p10  ;;  %s2394_s22 = sshll.u32 %s2469_s11, 4  ;;  %s2395_s22 = int_to_ptr.vmem [resolvable:$false] %s2394_s22 }
  0x68   : > { %v257_v55 = vld [vmem:[%s2625_s8 + $0x120] sm:$0xff]  ;;  %v259_v56 = vld [vmem:[%s2625_s8 + $0x130] sm:$0xff]  ;;  %v232_v58 = vld [vmem:[%s2625_s8 + $0x58] sm:$0xff]  ;;  %v287_v63 = vpack.c.bf16 %v227_v54, %v225_v53  ;;  %s2396_s23 = scalar_lea.vmem %s2395_s22, 16384  ;;  %p2397_p6 = scmp.lt.s32.totalorder %s3049_s27, %s2395_s22 }
  0x69   : > { %530 = vmatpush1.bf16.msra.mxu0 %v2180_v9  ;;  %2079 = vmatpush1.bf16.msra.mxu1 %v2180_v9  ;;  %v262_v59 = vld [vmem:[%s2625_s8 + $0x148] sm:$0xff]  ;;  %v264_v60 = vld [vmem:[%s2625_s8 + $0x158] sm:$0xff]  ;;  %v303_v0 = vpack.c.bf16 %v259_v56, %v257_v55  ;;  %v290_v2 = vpack.c.bf16 %v232_v58, %v230_v57  ;;  %v229_v5 = vld [vmem:[%s2625_s8 + $0x40] sm:$0xff]  ;;  %p2393_p2 = pneg %p2392_p1  ;;  %p2398_p12 = scmp.lt.s32.totalorder %s2396_s23, %s2390_s10 }
  0x6a   : > { %531 = vmatprep.subr.bf16.mxu0 %v2181_v10  ;;  %2064 = vmatprep.subr.bf16.mxu1 %v2181_v10  ;;  %v2217_v61 = vld [vmem:[#allocation5 + $0x160] ss:$8 sps:$4 sm:$0xff]   ;;  %v2222_v62 = vld [vmem:[#allocation5 + $0x154] ss:$8 sps:$4 sm:$0xff]   ;;  %v2220_v1 = vld [vmem:[#allocation5 + $0x150] ss:$8 sps:$4 sm:$0xff]   ;;  %v306_v3 = vpack.c.bf16 %v264_v60, %v262_v59 }
  0x6b   : > { %v2225_v4 = vld [vmem:[#allocation5 + $0x144] ss:$8 sps:$4 sm:$0xff]   ;;  %v231_v6 = vld [vmem:[%s2625_s8 + $0x50] sm:$0xff]  ;;  %v236_v8 = vld [vmem:[%s2625_s8 + $0x78] sm:$0xff]  ;;  %p2399_p3 = por %p2398_p12, %p2397_p6 }
  0x6c   : > { %v234_v7 = vld [vmem:[%s2625_s8 + $0x68] sm:$0xff]  ;;  %v261_v9 = vld [vmem:[%s2625_s8 + $0x140] sm:$0xff]  ;;  %v263_v10 = vld [vmem:[%s2625_s8 + $0x150] sm:$0xff]  ;;  %v289_v15 = vpack.c.bf16 %v231_v6, %v229_v5 }
  0x6d   : > { %532 = vmatpush1.bf16.msra.mxu0 %v2183_v11  ;;  %2080 = vmatpush1.bf16.msra.mxu1 %v2183_v11  ;;  %v266_v11 = vld [vmem:[%s2625_s8 + $0x168] sm:$0xff]  ;;  %v2228_v14 = vld [vmem:[#allocation5 + $0x134] ss:$8 sps:$4 sm:$0xff]   ;;  %v269_v41 = vld [vmem:[%s2625_s8 + $0x180] sm:$0xff]  ;;  %p2400_p9 = pnand %p2399_p3, %p2393_p2 }
  0x6e   : > { %533 = vmatprep.subr.bf16.mxu0 %v2184_v12  ;;  %2065 = vmatprep.subr.bf16.mxu1 %v2184_v12  ;;  %v268_v12 = vld [vmem:[%s2625_s8 + $0x178] sm:$0xff]  ;;  %v2223_v13 = vld [vmem:[#allocation5 + $0x140] ss:$8 sps:$4 sm:$0xff]   ;;  %v235_v22 = vld [vmem:[%s2625_s8 + $0x70] sm:$0xff] }
  0x6f   : > { %v238_v23 = vld [vmem:[%s2625_s8 + $0x88] sm:$0xff]  ;;  %v240_v24 = vld [vmem:[%s2625_s8 + $0x98] sm:$0xff]  ;;  %v239_v38 = vld [vmem:[%s2625_s8 + $0x90] sm:$0xff] }
  0x70   : > { %v242_v39 = vld [vmem:[%s2625_s8 + $0xa8] sm:$0xff]  ;;  %v244_v40 = vld [vmem:[%s2625_s8 + $0xb8] sm:$0xff]  ;;  %v271_v42 = vld [vmem:[%s2625_s8 + $0x190] sm:$0xff] }
  0x71   : > { %534 = vmatpush1.bf16.msra.mxu0 %v2186_v16  ;;  %2081 = vmatpush1.bf16.msra.mxu1 %v2186_v16  ;;  %v305_v16 = vpack.c.bf16 %v263_v10, %v261_v9  ;;  %v274_v43 = vld [vmem:[%s2625_s8 + $0x1a8] sm:$0xff]  ;;  %v276_v44 = vld [vmem:[%s2625_s8 + $0x1b8] sm:$0xff]  ;;  %v241_v53 = vld [vmem:[%s2625_s8 + $0xa0] sm:$0xff] }
  0x72   : > { %535 = vmatprep.subr.bf16.mxu0 %v2187_v17  ;;  %2066 = vmatprep.subr.bf16.mxu1 %v2187_v17  ;;  %v292_v17 = vpack.c.bf16 %v236_v8, %v234_v7  ;;  %v2235_v45 = vld [vmem:[#allocation5 + $0x100] ss:$8 sps:$4 sm:$0xff]   ;;  %v243_v54 = vld [vmem:[%s2625_s8 + $0xb0] sm:$0xff]  ;;  %v248_v56 = vld [vmem:[%s2625_s8 + $0xd8] sm:$0xff] }
  0x73   : > { %v246_v55 = vld [vmem:[%s2625_s8 + $0xc8] sm:$0xff]  ;;  %v273_v57 = vld [vmem:[%s2625_s8 + $0x1a0] sm:$0xff]  ;;  %v275_v58 = vld [vmem:[%s2625_s8 + $0x1b0] sm:$0xff] }
  0x74   : > { %v278_v59 = vld [vmem:[%s2625_s8 + $0x1c8] sm:$0xff]  ;;  %v280_v60 = vld [vmem:[%s2625_s8 + $0x1d8] sm:$0xff]  ;;  %v245_v5 = vld [vmem:[%s2625_s8 + $0xc0] sm:$0xff] }
  0x75   : > { %536 = vmatpush1.bf16.msra.mxu0 %v2189_v18  ;;  %2082 = vmatpush1.bf16.msra.mxu1 %v2189_v18  ;;  %v308_v18 = vpack.c.bf16 %v268_v12, %v266_v11  ;;  %v247_v6 = vld [vmem:[%s2625_s8 + $0xd0] sm:$0xff]  ;;  %v250_v7 = vld [vmem:[%s2625_s8 + $0xe8] sm:$0xff]  ;;  %v252_v8 = vld [vmem:[%s2625_s8 + $0xf8] sm:$0xff] }
  0x76   : > { %537 = vmatprep.subr.bf16.mxu0 %v2190_v19  ;;  %2067 = vmatprep.subr.bf16.mxu1 %v2190_v19  ;;  %v2226_v19 = vld [vmem:[#allocation5 + $0x130] ss:$8 sps:$4 sm:$0xff]   ;;  %v277_v9 = vld [vmem:[%s2625_s8 + $0x1c0] sm:$0xff]  ;;  %v282_v11 = vld [vmem:[%s2625_s8 + $0x1e8] sm:$0xff] }
  0x77   : > { %v279_v10 = vld [vmem:[%s2625_s8 + $0x1d0] sm:$0xff]  ;;  %v284_v12 = vld [vmem:[%s2625_s8 + $0x1f8] sm:$0xff] }
  0x79   : > { %538 = vmatpush2.bf16.msra.mxu0 %v2192_v20  ;;  %2083 = vmatpush2.bf16.msra.mxu1 %v2192_v20  ;;  %v2231_v20 = vld [vmem:[#allocation5 + $0x124] ss:$8 sps:$4 sm:$0xff]  }
  0x7a   : > { %539 = vmatprep.subr.bf16.mxu0 %v2193_v21  ;;  %2068 = vmatprep.subr.bf16.mxu1 %v2193_v21  ;;  %v233_v21 = vld [vmem:[%s2625_s8 + $0x60] sm:$0xff] }
  0x7d   : > { %540 = vmatpush2.bf16.msra.mxu0 %v2195_v25  ;;  %2084 = vmatpush2.bf16.msra.mxu1 %v2195_v25  ;;  %v265_v25 = vld [vmem:[%s2625_s8 + $0x160] sm:$0xff] }
  0x7e   : > { %541 = vmatprep.subr.bf16.mxu0 %v2196_v26  ;;  %2069 = vmatprep.subr.bf16.mxu1 %v2196_v26  ;;  %v267_v26 = vld [vmem:[%s2625_s8 + $0x170] sm:$0xff] }
  0x81   : > { %542 = vmatpush2.bf16.msra.mxu0 %v2198_v27  ;;  %2085 = vmatpush2.bf16.msra.mxu1 %v2198_v27  ;;  %v270_v27 = vld [vmem:[%s2625_s8 + $0x188] sm:$0xff] }
  0x82   : > { %543 = vmatprep.subr.bf16.mxu0 %v2199_v28  ;;  %2070 = vmatprep.subr.bf16.mxu1 %v2199_v28  ;;  %v272_v28 = vld [vmem:[%s2625_s8 + $0x198] sm:$0xff] }
  0x85   : > { %544 = vmatpush2.bf16.msra.mxu0 %v2201_v29  ;;  %2086 = vmatpush2.bf16.msra.mxu1 %v2201_v29  ;;  %v2229_v29 = vld [vmem:[#allocation5 + $0x120] ss:$8 sps:$4 sm:$0xff]  }
  0x86   : > { %545 = vmatprep.subr.bf16.mxu0 %v2202_v30  ;;  %2071 = vmatprep.subr.bf16.mxu1 %v2202_v30  ;;  %v2234_v30 = vld [vmem:[#allocation5 + $0x114] ss:$8 sps:$4 sm:$0xff]  }
  0x89   : > { %546 = vmatpush2.bf16.msra.mxu0 %v2204_v31  ;;  %2087 = vmatpush2.bf16.msra.mxu1 %v2204_v31  ;;  %v291_v31 = vpack.c.bf16 %v235_v22, %v233_v21  ;;  %v251_v21 = vld [vmem:[%s2625_s8 + $0xf0] sm:$0xff]  ;;  %v281_v22 = vld [vmem:[%s2625_s8 + $0x1e0] sm:$0xff] }
  0x8a   : > { %547 = vmatprep.subr.bf16.mxu0 %v2205_v32  ;;  %2072 = vmatprep.subr.bf16.mxu1 %v2205_v32  ;;  %v307_v32 = vpack.c.bf16 %v267_v26, %v265_v25  ;;  %v2255_v26 = vld [vmem:[#allocation5 + $0x1a4] ss:$8 sps:$4 sm:$0xff]  }
  0x8d   : > { %548 = vmatpush2.bf16.msra.mxu0 %v2207_v33  ;;  %2088 = vmatpush2.bf16.msra.mxu1 %v2207_v33  ;;  %v294_v33 = vpack.c.bf16 %v240_v24, %v238_v23  ;;  %v283_v23 = vld [vmem:[%s2625_s8 + $0x1f0] sm:$0xff] }
  0x8e   : > { %549 = vmatprep.subr.bf16.mxu0 %v2208_v34  ;;  %2073 = vmatprep.subr.bf16.mxu1 %v2208_v34  ;;  %v310_v34 = vpack.c.bf16 %v272_v28, %v270_v27  ;;  %v315_v25 = vpack.c.bf16 %v283_v23, %v281_v22  ;;  %v2253_v27 = vld [vmem:[#allocation5 + $0x1a0] ss:$8 sps:$4 sm:$0xff]   ;;  %v2258_v28 = vld [vmem:[#allocation5 + $0x194] ss:$8 sps:$4 sm:$0xff]  }
  0x91   : > { %550 = vmatpush2.bf16.msra.mxu0 %v2210_v35  ;;  %2089 = vmatpush2.bf16.msra.mxu1 %v2210_v35  ;;  %v2232_v35 = vld [vmem:[#allocation5 + $0x110] ss:$8 sps:$4 sm:$0xff]  }
  0x92   : > { %551 = vmatprep.subr.bf16.mxu0 %v2211_v36  ;;  %2074 = vmatprep.subr.bf16.mxu1 %v2211_v36  ;;  %v2237_v36 = vld [vmem:[#allocation5 + $0x104] ss:$8 sps:$4 sm:$0xff]  }
  0x95   : > { %552 = vmatpush2.bf16.msra.mxu0 %v2213_v37  ;;  %2090 = vmatpush2.bf16.msra.mxu1 %v2213_v37  ;;  %v237_v37 = vld [vmem:[%s2625_s8 + $0x80] sm:$0xff] }
  0x96   : > { %1016 = vmatprep.subr.bf16.mxu1 %v2216_v46  ;;  %v2240_v46 = vld [vmem:[#allocation5 + $0x1f4] ss:$8 sps:$4 sm:$0xff]  }
  0x98   : > { %554 = vmatmul.mubr.bf16.vlgmr.msra.gmra.mxu0 %v285_v47  ;;  %634 = vmatmul.mubr.bf16.vlgmr.msra.gmra.mxu1 %v301_v48  ;;  %v293_v47 = vpack.c.bf16 %v239_v38, %v237_v37  ;;  %v309_v48 = vpack.c.bf16 %v271_v42, %v269_v41 }
  0x99   : > { %563 = vmatprep.mubr.bf16.mxu0 %v288_v50  ;;  %643 = vmatprep.mubr.bf16.mxu1 %v304_v51  ;;  %v312_v50 = vpack.c.bf16 %v276_v44, %v274_v43  ;;  %v2238_v51 = vld [vmem:[#allocation5 + $0x1f0] ss:$8 sps:$4 sm:$0xff]  }
  0x9a   : > { %1017 = vmatpush1.bf16.msra.mxu1 %v2214_v49  ;;  %v296_v49 = vpack.c.bf16 %v244_v40, %v242_v39 }
  0x9b   : > { %1018 = vmatprep.subr.bf16.mxu1 %v2219_v52  ;;  %v2243_v52 = vld [vmem:[#allocation5 + $0x1e4] ss:$8 sps:$4 sm:$0xff]  }
  0x9e   : > { %1019 = vmatpush1.bf16.msra.mxu1 %v2217_v61  ;;  %v2241_v61 = vld [vmem:[#allocation5 + $0x1e0] ss:$8 sps:$4 sm:$0xff]  }
  0x9f   : > { %1020 = vmatprep.subr.bf16.mxu1 %v2222_v62  ;;  %v2246_v62 = vld [vmem:[#allocation5 + $0x1d4] ss:$8 sps:$4 sm:$0xff]  }
  0xa0   : > { %564 = vmatmul.mubr.bf16.gmra.mxu0 %v287_v63  ;;  %644 = vmatmul.mubr.bf16.gmra.mxu1 %v303_v0  ;;  %v295_v63 = vpack.c.bf16 %v243_v54, %v241_v53  ;;  %v311_v0 = vpack.c.bf16 %v275_v58, %v273_v57  ;;  %v2267_v53 = vld [vmem:[#allocation5 + $0x264] ss:$8 sps:$4 sm:$0xff]  }
  0xa1   : > { %573 = vmatprep.mubr.bf16.mxu0 %v290_v2  ;;  %653 = vmatprep.mubr.bf16.mxu1 %v306_v3  ;;  %v314_v2 = vpack.c.bf16 %v280_v60, %v278_v59  ;;  %v2244_v3 = vld [vmem:[#allocation5 + $0x1d0] ss:$8 sps:$4 sm:$0xff]   ;;  %v2265_v59 = vld [vmem:[#allocation5 + $0x260] ss:$8 sps:$4 sm:$0xff]  }
  0xa2   : > { %1021 = vmatpush1.bf16.msra.mxu1 %v2220_v1  ;;  %v298_v1 = vpack.c.bf16 %v248_v56, %v246_v55 }
  0xa3   : > { %1022 = vmatprep.subr.bf16.mxu1 %v2225_v4  ;;  %v2249_v4 = vld [vmem:[#allocation5 + $0x1c4] ss:$8 sps:$4 sm:$0xff]  }
  0xa6   : > { %1023 = vmatpush1.bf16.msra.mxu1 %v2223_v13  ;;  %v2247_v13 = vld [vmem:[#allocation5 + $0x1c0] ss:$8 sps:$4 sm:$0xff]  }
  0xa7   : > { %1024 = vmatprep.subr.bf16.mxu1 %v2228_v14  ;;  %v2252_v14 = vld [vmem:[#allocation5 + $0x1b4] ss:$8 sps:$4 sm:$0xff]  }
  0xa8   : > { %574 = vmatmul.mubr.bf16.gmra.mxu0 %v289_v15  ;;  %654 = vmatmul.mubr.bf16.gmra.mxu1 %v305_v16  ;;  %v297_v15 = vpack.c.bf16 %v247_v6, %v245_v5  ;;  %v313_v16 = vpack.c.bf16 %v279_v10, %v277_v9  ;;  %v2268_v6 = vld [vmem:[#allocation5 + $0x250] ss:$8 sps:$4 sm:$0xff]   ;;  %v2273_v9 = vld [vmem:[#allocation5 + $0x244] ss:$8 sps:$4 sm:$0xff]  }
  0xa9   : > { %583 = vmatprep.mubr.bf16.mxu0 %v292_v17  ;;  %663 = vmatprep.mubr.bf16.mxu1 %v308_v18  ;;  %v300_v17 = vpack.c.bf16 %v252_v8, %v250_v7  ;;  %v316_v18 = vpack.c.bf16 %v284_v12, %v282_v11 }
  0xaa   : > { %1025 = vmatpush1.bf16.msra.mxu1 %v2226_v19  ;;  %v2250_v19 = vld [vmem:[#allocation5 + $0x1b0] ss:$8 sps:$4 sm:$0xff]  }
  0xab   : > { %1026 = vmatprep.subr.bf16.mxu1 %v2231_v20  ;;  %v249_v20 = vld [vmem:[%s2625_s8 + $0xe0] sm:$0xff] }
  0xac   : > { %v299_v24 = vpack.c.bf16 %v251_v21, %v249_v20 }
  0xae   : > { %1027 = vmatpush1.bf16.msra.mxu1 %v2229_v29  ;;  %v2256_v29 = vld [vmem:[#allocation5 + $0x190] ss:$8 sps:$4 sm:$0xff]  }
  0xaf   : > { %1028 = vmatprep.subr.bf16.mxu1 %v2234_v30  ;;  %v2261_v30 = vld [vmem:[#allocation5 + $0x184] ss:$8 sps:$4 sm:$0xff]  }
  0xb0   : > { %584 = vmatmul.mubr.bf16.gmra.mxu0 %v291_v31  ;;  %664 = vmatmul.mubr.bf16.gmra.mxu1 %v307_v32  ;;  %v2259_v31 = vld [vmem:[#allocation5 + $0x180] ss:$8 sps:$4 sm:$0xff]   ;;  %v351_v32 = vlaneseq }
  0xb1   : > { %593 = vmatprep.mubr.bf16.mxu0 %v294_v33  ;;  %673 = vmatprep.mubr.bf16.mxu1 %v310_v34 }
  0xb2   : > { %1029 = vmatpush1.bf16.msra.mxu1 %v2232_v35  ;;  %v352_v33 = vshrl.u32 %v351_v32, 7 }
  0xb3   : > { %1030 = vmatprep.subr.bf16.mxu1 %v2237_v36  ;;  %v349_v36 = vld [vmem:[#allocation7] sm:$0x3] }
  0xb4   : > { %v2699_v34 = vsub.s32 1, %v352_v33  ;;  %v2701_v35 = vsub.s32 0, %v352_v33 }
  0xb6   : > { %1031 = vmatpush1.bf16.msra.mxu1 %v2235_v45  ;;  %v2706_v39 = vrot.slane %v349_v36, %v2699_v34  ;;  %v2709_v40 = vrot.slane %v349_v36, %v2701_v35 }
  0xb7   : > { %1032 = vmatprep.subr.bf16.mxu1 %v2240_v46 }
  0xb8   : > { %594 = vmatmul.mubr.bf16.gmra.mxu0 %v293_v47  ;;  %674 = vmatmul.mubr.bf16.gmra.mxu1 %v309_v48 }
  0xb9   : > { %603 = vmatprep.mubr.bf16.mxu0 %v296_v49  ;;  %683 = vmatprep.mubr.bf16.mxu1 %v312_v50  ;;  %v2262_v50 = vld [vmem:[#allocation5 + $0x270] ss:$8 sps:$4 sm:$0xff]  }
  0xba   : > { %1033 = vmatpush2.bf16.msra.mxu1 %v2238_v51  ;;  %v2264_v51 = vld [vmem:[#allocation5 + $0x274] ss:$8 sps:$4 sm:$0xff]  }
  0xbb   : > { %1034 = vmatprep.subr.bf16.mxu1 %v2243_v52  ;;  %1511 = vmatprep.subr.bf16.mxu0 %v2264_v51 }
  0xbc   : > { %1512 = vmatpush1.bf16.msra.mxu0 %v2262_v50 }
  0xbd   : > { %1513 = vmatprep.subr.bf16.mxu0 %v2267_v53 }
  0xbe   : > { %1035 = vmatpush2.bf16.msra.mxu1 %v2241_v61 }
  0xbf   : > { %1036 = vmatprep.subr.bf16.mxu1 %v2246_v62 }
  0xc0   : > { %604 = vmatmul.mubr.bf16.gmra.mxu0 %v295_v63  ;;  %684 = vmatmul.mubr.bf16.gmra.mxu1 %v311_v0  ;;  %v2270_v63 = vld [vmem:[#allocation5 + $0x254] ss:$8 sps:$4 sm:$0xff]  }
  0xc1   : > { %613 = vmatprep.mubr.bf16.mxu0 %v298_v1  ;;  %693 = vmatprep.mubr.bf16.mxu1 %v314_v2 }
  0xc2   : > { %1037 = vmatpush2.bf16.msra.mxu1 %v2244_v3  ;;  %1514 = vmatpush1.bf16.msra.mxu0 %v2265_v59 }
  0xc3   : > { %1038 = vmatprep.subr.bf16.mxu1 %v2249_v4  ;;  %1515 = vmatprep.subr.bf16.mxu0 %v2270_v63 }
  0xc6   : > { %1039 = vmatpush2.bf16.msra.mxu1 %v2247_v13  ;;  %1516 = vmatpush1.bf16.msra.mxu0 %v2268_v6  ;;  %v2288_v6 = vld [vmem:[#allocation5 + $0x2f4] ss:$8 sps:$4 sm:$0xff]  }
  0xc7   : > { %1040 = vmatprep.subr.bf16.mxu1 %v2252_v14  ;;  %1517 = vmatprep.subr.bf16.mxu0 %v2273_v9 }
  0xc8   : > { %614 = vmatmul.mubr.bf16.gmra.mxu0 %v297_v15  ;;  %694 = vmatmul.mubr.bf16.gmra.mxu1 %v313_v16  ;;  %v2271_v16 = vld [vmem:[#allocation5 + $0x240] ss:$8 sps:$4 sm:$0xff]  }
  0xc9   : > { %623 = vmatprep.mubr.bf16.mxu0 %v300_v17  ;;  %703 = vmatprep.mubr.bf16.mxu1 %v316_v18 }
  0xca   : > { %1041 = vmatpush2.bf16.msra.mxu1 %v2250_v19  ;;  %v2276_v19 = vld [vmem:[#allocation5 + $0x234] ss:$8 sps:$4 sm:$0xff]   ;;  %1518 = vmatpush1.bf16.msra.mxu0 %v2271_v16 }
  0xcb   : > { %1042 = vmatprep.subr.bf16.mxu1 %v2255_v26  ;;  %v2274_v26 = vld [vmem:[#allocation5 + $0x230] ss:$8 sps:$4 sm:$0xff]   ;;  %1519 = vmatprep.subr.bf16.mxu0 %v2276_v19 }
  0xce   : > { %1043 = vmatpush2.bf16.msra.mxu1 %v2253_v27  ;;  %1520 = vmatpush1.bf16.msra.mxu0 %v2274_v26 }
  0xcf   : > { %1044 = vmatprep.subr.bf16.mxu1 %v2258_v28 }
  0xd0   : > { %624 = vmatmul.mubr.bf16.gmra.mxu0 %v299_v24  ;;  %704 = vmatmul.mubr.bf16.gmra.mxu1 %v315_v25 }
  0xd2   : > { %1045 = vmatpush2.bf16.msra.mxu1 %v2256_v29  ;;  %v2279_v29 = vld [vmem:[#allocation5 + $0x224] ss:$8 sps:$4 sm:$0xff]  }
  0xd3   : > { %1046 = vmatprep.subr.bf16.mxu1 %v2261_v30  ;;  %1521 = vmatprep.subr.bf16.mxu0 %v2279_v29 }
  0xd6   : > { %1047 = vmatpush2.bf16.msra.mxu1 %v2259_v31 }
 0x158   : > { %v555_v37 = vpop.f32.mrf.mxu0  ;;  %v2703_v38 = vpop.f32.mrf.mxu1 }
 0x159   : > { %v556_v47 = vadd.f32 %v555_v37, %v2709_v40 }
 0x15a   : > { %v557_v41 = vpop.f32.mrf.mxu0  ;;  %v2711_v42 = vpop.f32.mrf.mxu1 }
 0x15b   : > { %v558_v45 = vadd.f32 %v557_v41, %v2706_v39  ;;  %v714_v60 = vmax.f32 %v556_v47, 0.0  ;;  %v2277_v41 = vld [vmem:[#allocation5 + $0x220] ss:$8 sps:$4 sm:$0xff]  }
 0x15c   : > { %v559_v43 = vpop.f32.mrf.mxu0  ;;  %v2713_v44 = vpop.f32.mrf.mxu1  ;;  %1522 = vmatpush1.bf16.msra.mxu0 %v2277_v41  ;;  %v2292_v41 = vld [vmem:[#allocation5 + $0x2d0] ss:$8 sps:$4 sm:$0xff]  }
 0x15d   : > { %v560_v46 = vadd.f32 %v559_v43, %v2709_v40  ;;  %v715_v57 = vmax.f32 %v558_v45, 0.0 }
 0x15e   : > { %v561_v48 = vpop.f32.mrf.mxu0  ;;  %v2718_v49 = vpop.f32.mrf.mxu1 }
 0x15f   : > { %v562_v52 = vadd.f32 %v561_v48, %v2706_v39  ;;  %v716_v54 = vmax.f32 %v560_v46, 0.0  ;;  %v2282_v46 = vld [vmem:[#allocation5 + $0x214] ss:$8 sps:$4 sm:$0xff]  }
 0x160   : > { %v565_v55 = vpop.f32.mrf.mxu0  ;;  %v2721_v56 = vpop.f32.mrf.mxu1  ;;  %1523 = vmatprep.subr.bf16.mxu0 %v2282_v46  ;;  %v2297_v46 = vld [vmem:[#allocation5 + $0x2c4] ss:$8 sps:$4 sm:$0xff]  }
 0x161   : > { %v717_v58 = vmax.f32 %v562_v52, 0.0  ;;  %v778_v1 = vpack.c.bf16 %v716_v54, %v714_v60  ;;  %v566_v7 = vadd.f32 %v565_v55, %v2709_v40  ;;  %v2280_v54 = vld [vmem:[#allocation5 + $0x210] ss:$8 sps:$4 sm:$0xff]  }
 0x162   : > { %v567_v61 = vpop.f32.mrf.mxu0  ;;  %v2723_v62 = vpop.f32.mrf.mxu1  ;;  %1524 = vmatpush1.bf16.msra.mxu0 %v2280_v54 }
 0x163   : > { %v779_v0 = vpack.c.bf16 %v717_v58, %v715_v57  ;;  %v568_v4 = vadd.f32 %v567_v61, %v2706_v39  ;;  %v718_v17 = vmax.f32 %v566_v7, 0.0  ;;  %v2285_v58 = vld [vmem:[#allocation5 + $0x204] ss:$8 sps:$4 sm:$0xff]  }
 0x164   : > { %v569_v2 = vpop.f32.mrf.mxu0  ;;  %v2725_v3 = vpop.f32.mrf.mxu1  ;;  %1525 = vmatprep.subr.bf16.mxu0 %v2285_v58 }
 0x165   : > { %v570_v5 = vadd.f32 %v569_v2, %v2709_v40  ;;  %1048 = vmatprep.mubr.bf16.mxu1 %v779_v0  ;;  %v719_v14 = vmax.f32 %v568_v4, 0.0  ;;  %v2283_v2 = vld [vmem:[#allocation5 + $0x200] ss:$8 sps:$4 sm:$0xff]  }
 0x166   : > { %v571_v8 = vpop.f32.mrf.mxu0  ;;  %1049 = vmatmul.mubr.bf16.vlgmr.msra.gmra.mxu1 %v778_v1  ;;  %v2731_v13 = vpop.f32.mrf.mxu1  ;;  %1526 = vmatpush1.bf16.msra.mxu0 %v2283_v2 }
 0x167   : > { %v572_v10 = vadd.f32 %v571_v8, %v2706_v39  ;;  %v720_v11 = vmax.f32 %v570_v5, 0.0  ;;  %1527 = vmatprep.subr.bf16.mxu0 %v2288_v6 }
 0x168   : > { %v575_v12 = vpop.f32.mrf.mxu0  ;;  %v2733_v23 = vpop.f32.mrf.mxu1 }
 0x169   : > { %v721_v15 = vmax.f32 %v572_v10, 0.0  ;;  %v780_v21 = vpack.c.bf16 %v720_v11, %v718_v17  ;;  %v576_v27 = vadd.f32 %v575_v12, %v2709_v40  ;;  %v2291_v17 = vld [vmem:[#allocation5 + $0x2e4] ss:$8 sps:$4 sm:$0xff]  }
 0x16a   : > { %v577_v18 = vpop.f32.mrf.mxu0  ;;  %v2739_v33 = vpop.f32.mrf.mxu1 }
 0x16b   : > { %v781_v20 = vpack.c.bf16 %v721_v15, %v719_v14  ;;  %v578_v24 = vadd.f32 %v577_v18, %v2706_v39  ;;  %v722_v43 = vmax.f32 %v576_v27, 0.0  ;;  %v2286_v14 = vld [vmem:[#allocation5 + $0x2f0] ss:$8 sps:$4 sm:$0xff]  }
 0x16c   : > { %v579_v22 = vpop.f32.mrf.mxu0  ;;  %v2741_v51 = vpop.f32.mrf.mxu1  ;;  %1528 = vmatpush2.bf16.msra.mxu0 %v2286_v14 }
 0x16d   : > { %v580_v25 = vadd.f32 %v579_v22, %v2709_v40  ;;  %1058 = vmatprep.mubr.bf16.mxu1 %v781_v20  ;;  %v723_v36 = vmax.f32 %v578_v24, 0.0  ;;  %1529 = vmatprep.subr.bf16.mxu0 %v2291_v17 }
 0x16e   : > { %v581_v28 = vpop.f32.mrf.mxu0  ;;  %1059 = vmatmul.mubr.bf16.gmra.mxu1 %v780_v21  ;;  %v2747_v63 = vpop.f32.mrf.mxu1 }
 0x16f   : > { %v582_v30 = vadd.f32 %v581_v28, %v2706_v39  ;;  %v724_v31 = vmax.f32 %v580_v25, 0.0  ;;  %v2289_v25 = vld [vmem:[#allocation5 + $0x2e0] ss:$8 sps:$4 sm:$0xff]   ;;  %v2294_v28 = vld [vmem:[#allocation5 + $0x2d4] ss:$8 sps:$4 sm:$0xff]  }
 0x170   : > { %v585_v32 = vpop.f32.mrf.mxu0  ;;  %v2749_v10 = vpop.f32.mrf.mxu1  ;;  %1530 = vmatpush2.bf16.msra.mxu0 %v2289_v25 }
 0x171   : > { %v725_v37 = vmax.f32 %v582_v30, 0.0  ;;  %v782_v48 = vpack.c.bf16 %v724_v31, %v722_v43  ;;  %v586_v55 = vadd.f32 %v585_v32, %v2709_v40  ;;  %1531 = vmatprep.subr.bf16.mxu0 %v2294_v28 }
 0x172   : > { %v587_v45 = vpop.f32.mrf.mxu0  ;;  %v2755_v21 = vpop.f32.mrf.mxu1 }
 0x173   : > { %v783_v47 = vpack.c.bf16 %v725_v37, %v723_v36  ;;  %v588_v52 = vadd.f32 %v587_v45, %v2706_v39  ;;  %v726_v4 = vmax.f32 %v586_v55, 0.0  ;;  %v2295_v55 = vld [vmem:[#allocation5 + $0x2c0] ss:$8 sps:$4 sm:$0xff]  }
 0x174   : > { %v589_v50 = vpop.f32.mrf.mxu0  ;;  %v2757_v32 = vpop.f32.mrf.mxu1  ;;  %1532 = vmatpush2.bf16.msra.mxu0 %v2292_v41 }
 0x175   : > { %v590_v53 = vadd.f32 %v589_v50, %v2709_v40  ;;  %1068 = vmatprep.mubr.bf16.mxu1 %v783_v47  ;;  %v727_v0 = vmax.f32 %v588_v52, 0.0  ;;  %1533 = vmatprep.subr.bf16.mxu0 %v2297_v46 }
 0x176   : > { %v591_v57 = vpop.f32.mrf.mxu0  ;;  %1069 = vmatmul.mubr.bf16.gmra.mxu1 %v782_v48  ;;  %v2763_v52 = vpop.f32.mrf.mxu1 }
 0x177   : > { %v592_v59 = vadd.f32 %v591_v57, %v2706_v39  ;;  %v728_v60 = vmax.f32 %v590_v53, 0.0 }
 0x178   : > { %v595_v61 = vpop.f32.mrf.mxu0  ;;  %1534 = vmatpush2.bf16.msra.mxu0 %v2295_v55 }
 0x179   : > { %v729_v1 = vmax.f32 %v592_v59, 0.0  ;;  %v784_v8 = vpack.c.bf16 %v728_v60, %v726_v4  ;;  %v596_v15 = vadd.f32 %v595_v61, %v2709_v40  ;;  %v2300_v59 = vld [vmem:[#allocation5 + $0x2b4] ss:$8 sps:$4 sm:$0xff]  }
 0x17a   : > { %v597_v5 = vpop.f32.mrf.mxu0  ;;  %1535 = vmatprep.subr.bf16.mxu0 %v2300_v59 }
 0x17b   : > { %v785_v7 = vpack.c.bf16 %v729_v1, %v727_v0  ;;  %v598_v11 = vadd.f32 %v597_v5, %v2706_v39  ;;  %v730_v26 = vmax.f32 %v596_v15, 0.0  ;;  %v2765_v1 = vpop.f32.mrf.mxu1  ;;  %v2298_v5 = vld [vmem:[#allocation5 + $0x2b0] ss:$8 sps:$4 sm:$0xff]  }
 0x17c   : > { %v599_v9 = vpop.f32.mrf.mxu0  ;;  %1536 = vmatpush2.bf16.msra.mxu0 %v2298_v5  ;;  %v2303_v5 = vld [vmem:[#allocation5 + $0x2a4] ss:$8 sps:$4 sm:$0xff]  }
 0x17d   : > { %v600_v12 = vadd.f32 %v599_v9, %v2709_v40  ;;  %1078 = vmatprep.mubr.bf16.mxu1 %v785_v7  ;;  %v731_v22 = vmax.f32 %v598_v11, 0.0  ;;  %1537 = vmatprep.subr.bf16.mxu0 %v2303_v5 }
 0x17e   : > { %v601_v16 = vpop.f32.mrf.mxu0  ;;  %1079 = vmatmul.mubr.bf16.gmra.mxu1 %v784_v8 }
 0x17f   : > { %v602_v18 = vadd.f32 %v601_v16, %v2706_v39  ;;  %v732_v19 = vmax.f32 %v600_v12, 0.0  ;;  %v2771_v12 = vpop.f32.mrf.mxu1 }
 0x180   : > { %v605_v20 = vpop.f32.mrf.mxu0 }
 0x181   : > { %v733_v24 = vmax.f32 %v602_v18, 0.0  ;;  %v786_v30 = vpack.c.bf16 %v732_v19, %v730_v26  ;;  %v606_v43 = vadd.f32 %v605_v20, %v2709_v40  ;;  %v638_v19 = vadd.f32 %v2711_v42, %v2706_v39  ;;  %v2777_v25 = vpop.f32.mrf.mxu1 }
 0x182   : > { %v607_v27 = vpop.f32.mrf.mxu0  ;;  %v642_v20 = vadd.f32 %v2718_v49, %v2706_v39 }
 0x183   : > { %v787_v29 = vpack.c.bf16 %v733_v24, %v731_v22  ;;  %v608_v36 = vadd.f32 %v607_v27, %v2706_v39  ;;  %v734_v57 = vmax.f32 %v606_v43, 0.0 }
 0x184   : > { %v609_v31 = vpop.f32.mrf.mxu0  ;;  %v749_v42 = vmax.f32 %v642_v20, 0.0  ;;  %v2309_v20 = vld [vmem:[#allocation5 + $0x284] ss:$8 sps:$4 sm:$0xff]  }
 0x185   : > { %v610_v37 = vadd.f32 %v609_v31, %v2709_v40  ;;  %1088 = vmatprep.mubr.bf16.mxu1 %v787_v29  ;;  %v735_v53 = vmax.f32 %v608_v36, 0.0 }
 0x186   : > { %v611_v45 = vpop.f32.mrf.mxu0  ;;  %1089 = vmatmul.mubr.bf16.gmra.mxu1 %v786_v30  ;;  %v747_v30 = vmax.f32 %v638_v19, 0.0 }
 0x187   : > { %v612_v47 = vadd.f32 %v611_v45, %v2706_v39  ;;  %v736_v48 = vmax.f32 %v610_v37, 0.0  ;;  %v681_v37 = vpop.f32.mrf.mxu1 }
 0x188   : > { %v615_v50 = vpop.f32.mrf.mxu0  ;;  %v795_v46 = vpack.c.bf16 %v749_v42, %v747_v30  ;;  %v666_v30 = vadd.f32 %v2749_v10, %v2709_v40  ;;  %v676_v10 = vadd.f32 %v2765_v1, %v2709_v40 }
 0x189   : > { %v737_v54 = vmax.f32 %v612_v47, 0.0  ;;  %v788_v61 = vpack.c.bf16 %v736_v48, %v734_v57  ;;  %v616_v6 = vadd.f32 %v615_v50, %v2709_v40  ;;  %v648_v47 = vadd.f32 %v2723_v62, %v2706_v39  ;;  %v2791_v55 = vpop.f32.mrf.mxu1 }
 0x18a   : > { %v617_v58 = vpop.f32.mrf.mxu0  ;;  %v652_v48 = vadd.f32 %v2731_v13, %v2706_v39  ;;  %v636_v50 = vadd.f32 %v2703_v38, %v2709_v40  ;;  %v658_v13 = vadd.f32 %v2739_v33, %v2706_v39  ;;  %v662_v38 = vadd.f32 %v2747_v63, %v2706_v39  ;;  %v2306_v63 = vld [vmem:[#allocation5 + $0x294] ss:$8 sps:$4 sm:$0xff]  }
 0x18b   : > { %v789_v60 = vpack.c.bf16 %v737_v54, %v735_v53  ;;  %v618_v2 = vadd.f32 %v617_v58, %v2706_v39  ;;  %v738_v16 = vmax.f32 %v616_v6, 0.0  ;;  %v640_v54 = vadd.f32 %v2713_v44, %v2709_v40  ;;  %v687_v62 = vpop.f32.mrf.mxu1 }
 0x18c   : > { %v619_v0 = vpop.f32.mrf.mxu0  ;;  %v751_v57 = vmax.f32 %v648_v47, 0.0  ;;  %v753_v58 = vmax.f32 %v652_v48, 0.0  ;;  %v746_v59 = vmax.f32 %v636_v50, 0.0  ;;  %v646_v44 = vadd.f32 %v2721_v56, %v2709_v40 }
 0x18d   : > { %v620_v4 = vadd.f32 %v619_v0, %v2709_v40  ;;  %1098 = vmatprep.mubr.bf16.mxu1 %v789_v60  ;;  %v739_v14 = vmax.f32 %v618_v2, 0.0  ;;  %v748_v60 = vmax.f32 %v640_v54, 0.0  ;;  %v650_v2 = vadd.f32 %v2725_v3, %v2709_v40 }
 0x18e   : > { %v621_v7 = vpop.f32.mrf.mxu0  ;;  %1099 = vmatmul.mubr.bf16.gmra.mxu1 %v788_v61  ;;  %v797_v61 = vpack.c.bf16 %v753_v58, %v751_v57  ;;  %v755_v6 = vmax.f32 %v658_v13, 0.0  ;;  %v668_v56 = vadd.f32 %v2755_v21, %v2706_v39  ;;  %v672_v3 = vadd.f32 %v2763_v52, %v2706_v39  ;;  %v2307_v21 = vld [vmem:[#allocation5 + $0x280] ss:$8 sps:$4 sm:$0xff]  }
 0x18f   : > { %v622_v8 = vadd.f32 %v621_v7, %v2706_v39  ;;  %v740_v9 = vmax.f32 %v620_v4, 0.0  ;;  %v794_v0 = vpack.c.bf16 %v748_v60, %v746_v59  ;;  %v2801_v4 = vpop.f32.mrf.mxu1  ;;  %v757_v7 = vmax.f32 %v662_v38, 0.0 }
 0x190   : > { %v625_v11 = vpop.f32.mrf.mxu0  ;;  %v752_v33 = vmax.f32 %v650_v2, 0.0  ;;  %v762_v54 = vmax.f32 %v676_v10, 0.0  ;;  %v686_v1 = vadd.f32 %v2791_v55, %v2709_v40 }
 0x191   : > { %v741_v15 = vmax.f32 %v622_v8, 0.0  ;;  %v790_v22 = vpack.c.bf16 %v740_v9, %v738_v16  ;;  %v626_v28 = vadd.f32 %v625_v11, %v2709_v40  ;;  %v2301_v8 = vld [vmem:[#allocation5 + $0x2a0] ss:$8 sps:$4 sm:$0xff]   ;;  %v750_v9 = vmax.f32 %v646_v44, 0.0  ;;  %v691_v11 = vpop.f32.mrf.mxu1 }
 0x192   : > { %v627_v17 = vpop.f32.mrf.mxu0  ;;  %1538 = vmatpush2.bf16.msra.mxu0 %v2301_v8  ;;  %v766_v44 = vmax.f32 %v686_v1, 0.0 }
 0x193   : > { %v791_v18 = vpack.c.bf16 %v741_v15, %v739_v14  ;;  %v628_v26 = vadd.f32 %v627_v17, %v2706_v39  ;;  %v742_v43 = vmax.f32 %v626_v28, 0.0  ;;  %v799_v14 = vpack.c.bf16 %v757_v7, %v755_v6  ;;  %v2304_v15 = vld [vmem:[#allocation5 + $0x290] ss:$8 sps:$4 sm:$0xff]   ;;  %v695_v19 = vpop.f32.mrf.mxu1  ;;  %1539 = vmatprep.subr.bf16.mxu0 %v2306_v63 }
 0x194   : > { %v629_v24 = vpop.f32.mrf.mxu0  ;;  %v796_v16 = vpack.c.bf16 %v752_v33, %v750_v9  ;;  %v656_v17 = vadd.f32 %v2733_v23, %v2709_v40  ;;  %v678_v23 = vadd.f32 %v2771_v12, %v2706_v39  ;;  %v688_v12 = vadd.f32 %v687_v62, %v2706_v39 }
 0x195   : > { %v630_v27 = vadd.f32 %v629_v24, %v2709_v40  ;;  %1108 = vmatprep.mubr.bf16.mxu1 %v791_v18  ;;  %v743_v49 = vmax.f32 %v628_v26, 0.0  ;;  %v660_v18 = vadd.f32 %v2741_v51, %v2709_v40  ;;  %v761_v24 = vmax.f32 %v672_v3, 0.0  ;;  %v697_v52 = vpop.f32.mrf.mxu1 }
 0x196   : > { %v631_v29 = vpop.f32.mrf.mxu0  ;;  %1109 = vmatmul.mubr.bf16.gmra.mxu1 %v790_v22  ;;  %1540 = vmatpush2.bf16.msra.mxu0 %v2304_v15  ;;  %v759_v22 = vmax.f32 %v668_v56, 0.0  ;;  %v754_v26 = vmax.f32 %v656_v17, 0.0  ;;  %v682_v51 = vadd.f32 %v681_v37, %v2706_v39  ;;  %v692_v37 = vadd.f32 %v691_v11, %v2706_v39 }
 0x197   : > { %v632_v31 = vadd.f32 %v631_v29, %v2706_v39  ;;  %v744_v36 = vmax.f32 %v630_v27, 0.0  ;;  %v756_v27 = vmax.f32 %v660_v18, 0.0  ;;  %1541 = vmatprep.subr.bf16.mxu0 %v2309_v20  ;;  %v699_v42 = vpop.f32.mrf.mxu1  ;;  %v767_v50 = vmax.f32 %v688_v12, 0.0 }
 0x198   : > { %v801_v28 = vpack.c.bf16 %v761_v24, %v759_v22  ;;  %v698_v60 = vadd.f32 %v697_v52, %v2706_v39  ;;  %v696_v33 = vadd.f32 %v695_v19, %v2709_v40  ;;  %v700_v55 = vadd.f32 %v699_v42, %v2709_v40  ;;  %v844_v19 = vld [vmem:[#allocation7 + $0x2] sm:$0x3] }
 0x199   : > { %v745_v41 = vmax.f32 %v632_v31, 0.0  ;;  %v792_v53 = vpack.c.bf16 %v744_v36, %v742_v43  ;;  %v798_v29 = vpack.c.bf16 %v756_v27, %v754_v26  ;;  %v670_v31 = vadd.f32 %v2757_v32, %v2709_v40 }
 0x19a   : > { %1542 = vmatpush2.bf16.msra.mxu0 %v2307_v21  ;;  %v763_v36 = vmax.f32 %v678_v23, 0.0  ;;  %v680_v32 = vadd.f32 %v2777_v25, %v2709_v40  ;;  %v690_v25 = vadd.f32 %v2801_v4, %v2709_v40  ;;  %v771_v38 = vmax.f32 %v698_v60, 0.0 }
 0x19b   : > { %v793_v45 = vpack.c.bf16 %v745_v41, %v743_v49  ;;  %v765_v49 = vmax.f32 %v682_v51, 0.0  ;;  %v758_v41 = vmax.f32 %v666_v30, 0.0  ;;  %v760_v43 = vmax.f32 %v670_v31, 0.0 }
 0x19c   : > { %v764_v57 = vmax.f32 %v680_v32, 0.0  ;;  %v768_v2 = vmax.f32 %v690_v25, 0.0  ;;  %v770_v63 = vmax.f32 %v696_v33, 0.0  ;;  %v2837_v22 = vrot.slane %v844_v19, %v2699_v34 }
 0x19d   : > { %1118 = vmatprep.mubr.bf16.mxu1 %v793_v45  ;;  %v701_v45 = vpop.f32.mrf.mxu1  ;;  %v800_v47 = vpack.c.bf16 %v760_v43, %v758_v41  ;;  %v2840_v24 = vrot.slane %v844_v19, %v2701_v35 }
 0x19e   : > { %1119 = vmatmul.mubr.bf16.gmra.mxu1 %v792_v53  ;;  %v769_v53 = vmax.f32 %v692_v37, 0.0  ;;  %v702_v62 = vadd.f32 %v701_v45, %v2706_v39  ;;  %v804_v9 = vpack.c.bf16 %v768_v2, %v766_v44 }
 0x19f   : > { %1128 = vmatprep.mubr.bf16.mxu1 %v795_v46  ;;  %v803_v46 = vpack.c.bf16 %v765_v49, %v763_v36  ;;  %v705_v48 = vpop.f32.mrf.mxu1 }
 0x1a0   : > { %v805_v59 = vpack.c.bf16 %v769_v53, %v767_v50  ;;  %v706_v15 = vadd.f32 %v705_v48, %v2709_v40 }
 0x1a1   : > { %v707_v58 = vpop.f32.mrf.mxu1 }
 0x1a2   : > { %v708_v7 = vadd.f32 %v707_v58, %v2706_v39 }
 0x1a3   : > { %v709_v13 = vpop.f32.mrf.mxu1 }
 0x1a4   : > { %v775_v4 = vmax.f32 %v708_v7, 0.0 }
 0x1a5   : > { %v711_v5 = vpop.f32.mrf.mxu1 }
 0x1a6   : > { %1129 = vmatmul.mubr.bf16.gmra.mxu1 %v794_v0  ;;  %v773_v0 = vmax.f32 %v702_v62, 0.0  ;;  %v712_v8 = vadd.f32 %v711_v5, %v2706_v39  ;;  %v774_v39 = vmax.f32 %v706_v15, 0.0 }
 0x1a7   : > { %1138 = vmatprep.mubr.bf16.mxu1 %v797_v61  ;;  %v802_v61 = vpack.c.bf16 %v764_v57, %v762_v54 }
 0x1a8   : > { %v807_v6 = vpack.c.bf16 %v773_v0, %v771_v38  ;;  %v777_v11 = vmax.f32 %v712_v8, 0.0 }
 0x1aa   : > { %v809_v56 = vpack.c.bf16 %v777_v11, %v775_v4 }
 0x1ae   : > { %1139 = vmatmul.mubr.bf16.gmra.mxu1 %v796_v16  ;;  %v710_v16 = vadd.f32 %v709_v13, %v2709_v40 }
 0x1af   : > { %1148 = vmatprep.mubr.bf16.mxu1 %v799_v14  ;;  %v772_v14 = vmax.f32 %v700_v55, 0.0 }
 0x1b0   : > { %v776_v17 = vmax.f32 %v710_v16, 0.0 }
 0x1b1   : > { %v806_v3 = vpack.c.bf16 %v772_v14, %v770_v63 }
 0x1b2   : > { %v808_v18 = vpack.c.bf16 %v776_v17, %v774_v39 }
 0x1b6   : > { %1149 = vmatmul.mubr.bf16.gmra.mxu1 %v798_v29 }
 0x1b7   : > { %1158 = vmatprep.mubr.bf16.mxu1 %v801_v28 }
 0x1be   : > { %1159 = vmatmul.mubr.bf16.gmra.mxu1 %v800_v47 }
 0x1bf   : > { %1168 = vmatprep.mubr.bf16.mxu1 %v803_v46 }
 0x1c6   : > { %1169 = vmatmul.mubr.bf16.gmra.mxu1 %v802_v61 }
 0x1c7   : > { %1178 = vmatprep.mubr.bf16.mxu1 %v805_v59 }
 0x1ce   : > { %1179 = vmatmul.mubr.bf16.gmra.mxu1 %v804_v9 }
 0x1cf   : > { %1188 = vmatprep.mubr.bf16.mxu1 %v807_v6 }
 0x1d6   : > { %1189 = vmatmul.mubr.bf16.gmra.mxu1 %v806_v3 }
 0x1d7   : > { %1198 = vmatprep.mubr.bf16.mxu1 %v809_v56 }
 0x1de   : > { %1199 = vmatmul.mubr.bf16.gmra.mxu1 %v808_v18 }
 0x226   : > { %v1050_v20 = vpop.f32.mrf.mxu1 }
 0x227   : > { %v1051_v52 = vadd.f32 %v1050_v20, %v2840_v24 }
 0x228   : > { %v1052_v21 = vpop.f32.mrf.mxu1 }
 0x229   : > { %v1053_v27 = vadd.f32 %v1052_v21, %v2837_v22  ;;  %v1209_v42 = vmax.f32 %v1051_v52, 0.0 }
 0x22a   : > { %v1054_v26 = vpop.f32.mrf.mxu1 }
 0x22b   : > { %v1055_v40 = vadd.f32 %v1054_v26, %v2840_v24  ;;  %v1210_v30 = vmax.f32 %v1053_v27, 0.0 }
 0x22c   : > { %v1056_v28 = vpop.f32.mrf.mxu1 }
 0x22d   : > { %v1057_v23 = vadd.f32 %v1056_v28, %v2837_v22  ;;  %v1211_v51 = vmax.f32 %v1055_v40, 0.0 }
 0x22e   : > { %v1060_v29 = vpop.f32.mrf.mxu1 }
 0x22f   : > { %v1212_v31 = vmax.f32 %v1057_v23, 0.0  ;;  %v1273_v41 = vpack.c.bf16 %v1211_v51, %v1209_v42  ;;  %v1061_v12 = vadd.f32 %v1060_v29, %v2840_v24 }
 0x230   : > { %v1062_v36 = vpop.f32.mrf.mxu1 }
 0x231   : > { %v1274_v49 = vpack.c.bf16 %v1212_v31, %v1210_v30  ;;  %v1063_v45 = vadd.f32 %v1062_v36, %v2837_v22  ;;  %v1213_v53 = vmax.f32 %v1061_v12, 0.0 }
 0x232   : > { %v1064_v43 = vpop.f32.mrf.mxu1 }
 0x233   : > { %v1065_v46 = vadd.f32 %v1064_v43, %v2840_v24  ;;  %1543 = vmatprep.mubr.bf16.mxu0 %v1274_v49  ;;  %v1214_v48 = vmax.f32 %v1063_v45, 0.0 }
 0x234   : > { %v1066_v37 = vpop.f32.mrf.mxu1  ;;  %1544 = vmatmul.mubr.bf16.vlgmr.msra.gmra.mxu0 %v1273_v41 }
 0x235   : > { %v1067_v47 = vadd.f32 %v1066_v37, %v2837_v22  ;;  %v1215_v10 = vmax.f32 %v1065_v46, 0.0 }
 0x236   : > { %v1070_v32 = vpop.f32.mrf.mxu1 }
 0x237   : > { %v1216_v50 = vmax.f32 %v1067_v47, 0.0  ;;  %v1275_v58 = vpack.c.bf16 %v1215_v10, %v1213_v53  ;;  %v1071_v61 = vadd.f32 %v1070_v32, %v2840_v24 }
 0x238   : > { %v1072_v54 = vpop.f32.mrf.mxu1 }
 0x239   : > { %v1276_v57 = vpack.c.bf16 %v1216_v50, %v1214_v48  ;;  %v1073_v60 = vadd.f32 %v1072_v54, %v2837_v22  ;;  %v1217_v2 = vmax.f32 %v1071_v61, 0.0 }
 0x23a   : > { %v1074_v59 = vpop.f32.mrf.mxu1 }
 0x23b   : > { %v1075_v62 = vadd.f32 %v1074_v59, %v2840_v24  ;;  %1553 = vmatprep.mubr.bf16.mxu0 %v1276_v57  ;;  %v1218_v0 = vmax.f32 %v1073_v60, 0.0 }
 0x23c   : > { %v1076_v1 = vpop.f32.mrf.mxu1  ;;  %1554 = vmatmul.mubr.bf16.gmra.mxu0 %v1275_v58 }
 0x23d   : > { %v1077_v25 = vadd.f32 %v1076_v1, %v2837_v22  ;;  %v1219_v13 = vmax.f32 %v1075_v62, 0.0 }
 0x23e   : > { %v1080_v38 = vpop.f32.mrf.mxu1 }
 0x23f   : > { %v1220_v44 = vmax.f32 %v1077_v25, 0.0  ;;  %v1277_v7 = vpack.c.bf16 %v1219_v13, %v1217_v2  ;;  %v1081_v55 = vadd.f32 %v1080_v38, %v2840_v24 }
 0x240   : > { %v1082_v5 = vpop.f32.mrf.mxu1 }
 0x241   : > { %v1278_v6 = vpack.c.bf16 %v1220_v44, %v1218_v0  ;;  %v1083_v9 = vadd.f32 %v1082_v5, %v2837_v22  ;;  %v1221_v15 = vmax.f32 %v1081_v55, 0.0 }
 0x242   : > { %v1084_v8 = vpop.f32.mrf.mxu1 }
 0x243   : > { %v1085_v33 = vadd.f32 %v1084_v8, %v2840_v24  ;;  %1563 = vmatprep.mubr.bf16.mxu0 %v1278_v6  ;;  %v1222_v56 = vmax.f32 %v1083_v9, 0.0 }
 0x244   : > { %v1086_v4 = vpop.f32.mrf.mxu1  ;;  %1564 = vmatmul.mubr.bf16.gmra.mxu0 %v1277_v7 }
 0x245   : > { %v1087_v11 = vadd.f32 %v1086_v4, %v2837_v22  ;;  %v1223_v63 = vmax.f32 %v1085_v33, 0.0 }
 0x246   : > { %v1090_v14 = vpop.f32.mrf.mxu1 }
 0x247   : > { %v1224_v3 = vmax.f32 %v1087_v11, 0.0  ;;  %v1279_v17 = vpack.c.bf16 %v1223_v63, %v1221_v15  ;;  %v1091_v21 = vadd.f32 %v1090_v14, %v2840_v24 }
 0x248   : > { %v1092_v16 = vpop.f32.mrf.mxu1 }
 0x249   : > { %v1280_v39 = vpack.c.bf16 %v1224_v3, %v1222_v56  ;;  %v1093_v19 = vadd.f32 %v1092_v16, %v2837_v22  ;;  %v1225_v51 = vmax.f32 %v1091_v21, 0.0 }
 0x24a   : > { %v1094_v18 = vpop.f32.mrf.mxu1 }
 0x24b   : > { %v1095_v20 = vadd.f32 %v1094_v18, %v2840_v24  ;;  %1573 = vmatprep.mubr.bf16.mxu0 %v1280_v39  ;;  %v1226_v28 = vmax.f32 %v1093_v19, 0.0 }
 0x24c   : > { %v1096_v26 = vpop.f32.mrf.mxu1  ;;  %1574 = vmatmul.mubr.bf16.gmra.mxu0 %v1279_v17 }
 0x24d   : > { %v1097_v27 = vadd.f32 %v1096_v26, %v2837_v22  ;;  %v1227_v40 = vmax.f32 %v1095_v20, 0.0 }
 0x24e   : > { %v1100_v52 = vpop.f32.mrf.mxu1 }
 0x24f   : > { %v1228_v23 = vmax.f32 %v1097_v27, 0.0  ;;  %v1281_v31 = vpack.c.bf16 %v1227_v40, %v1225_v51  ;;  %v1101_v41 = vadd.f32 %v1100_v52, %v2840_v24 }
 0x250   : > { %v1102_v29 = vpop.f32.mrf.mxu1 }
 0x251   : > { %v1282_v30 = vpack.c.bf16 %v1228_v23, %v1226_v28  ;;  %v1103_v36 = vadd.f32 %v1102_v29, %v2837_v22  ;;  %v1229_v10 = vmax.f32 %v1101_v41, 0.0 }
 0x252   : > { %v1104_v42 = vpop.f32.mrf.mxu1 }
 0x253   : > { %v1105_v49 = vadd.f32 %v1104_v42, %v2840_v24  ;;  %1583 = vmatprep.mubr.bf16.mxu0 %v1282_v30  ;;  %v1230_v37 = vmax.f32 %v1103_v36, 0.0 }
 0x254   : > { %v1106_v43 = vpop.f32.mrf.mxu1  ;;  %1584 = vmatmul.mubr.bf16.gmra.mxu0 %v1281_v31 }
 0x255   : > { %v1107_v45 = vadd.f32 %v1106_v43, %v2837_v22  ;;  %v1231_v46 = vmax.f32 %v1105_v49, 0.0 }
 0x256   : > { %v1110_v12 = vpop.f32.mrf.mxu1 }
 0x257   : > { %v1232_v47 = vmax.f32 %v1107_v45, 0.0  ;;  %v1283_v50 = vpack.c.bf16 %v1231_v46, %v1229_v10  ;;  %v1111_v58 = vadd.f32 %v1110_v12, %v2840_v24 }
 0x258   : > { %v1112_v32 = vpop.f32.mrf.mxu1 }
 0x259   : > { %v1284_v48 = vpack.c.bf16 %v1232_v47, %v1230_v37  ;;  %v1113_v54 = vadd.f32 %v1112_v32, %v2837_v22  ;;  %v1233_v13 = vmax.f32 %v1111_v58, 0.0 }
 0x25a   : > { %v1114_v53 = vpop.f32.mrf.mxu1 }
 0x25b   : > { %v1115_v57 = vadd.f32 %v1114_v53, %v2840_v24  ;;  %1593 = vmatprep.mubr.bf16.mxu0 %v1284_v48  ;;  %v1234_v1 = vmax.f32 %v1113_v54, 0.0 }
 0x25c   : > { %v1116_v59 = vpop.f32.mrf.mxu1  ;;  %1594 = vmatmul.mubr.bf16.gmra.mxu0 %v1283_v50 }
 0x25d   : > { %v1117_v60 = vadd.f32 %v1116_v59, %v2837_v22  ;;  %v1235_v62 = vmax.f32 %v1115_v57, 0.0 }
 0x25e   : > { %v1120_v61 = vpop.f32.mrf.mxu1 }
 0x25f   : > { %v1236_v25 = vmax.f32 %v1117_v60, 0.0  ;;  %v1285_v44 = vpack.c.bf16 %v1235_v62, %v1233_v13  ;;  %v1121_v7 = vadd.f32 %v1120_v61, %v2840_v24 }
 0x260   : > { %v1122_v38 = vpop.f32.mrf.mxu1 }
 0x261   : > { %v1286_v0 = vpack.c.bf16 %v1236_v25, %v1234_v1  ;;  %v1123_v5 = vadd.f32 %v1122_v38, %v2837_v22  ;;  %v1237_v63 = vmax.f32 %v1121_v7, 0.0 }
 0x262   : > { %v1124_v2 = vpop.f32.mrf.mxu1 }
 0x263   : > { %v1125_v6 = vadd.f32 %v1124_v2, %v2840_v24  ;;  %1603 = vmatprep.mubr.bf16.mxu0 %v1286_v0  ;;  %v1238_v4 = vmax.f32 %v1123_v5, 0.0 }
 0x264   : > { %v1126_v8 = vpop.f32.mrf.mxu1  ;;  %1604 = vmatmul.mubr.bf16.gmra.mxu0 %v1285_v44 }
 0x265   : > { %v1127_v9 = vadd.f32 %v1126_v8, %v2837_v22  ;;  %v1239_v33 = vmax.f32 %v1125_v6, 0.0 }
 0x266   : > { %v1130_v55 = vpop.f32.mrf.mxu1 }
 0x267   : > { %v1240_v11 = vmax.f32 %v1127_v9, 0.0  ;;  %v1287_v3 = vpack.c.bf16 %v1239_v33, %v1237_v63  ;;  %v1131_v17 = vadd.f32 %v1130_v55, %v2840_v24 }
 0x268   : > { %v1132_v14 = vpop.f32.mrf.mxu1 }
 0x269   : > { %v1288_v56 = vpack.c.bf16 %v1240_v11, %v1238_v4  ;;  %v1133_v16 = vadd.f32 %v1132_v14, %v2837_v22  ;;  %v1241_v40 = vmax.f32 %v1131_v17, 0.0 }
 0x26a   : > { %v1134_v15 = vpop.f32.mrf.mxu1 }
 0x26b   : > { %v1135_v39 = vadd.f32 %v1134_v15, %v2840_v24  ;;  %1613 = vmatprep.mubr.bf16.mxu0 %v1288_v56  ;;  %v1242_v26 = vmax.f32 %v1133_v16, 0.0 }
 0x26c   : > { %v1136_v18 = vpop.f32.mrf.mxu1  ;;  %1614 = vmatmul.mubr.bf16.gmra.mxu0 %v1287_v3 }
 0x26d   : > { %v1137_v19 = vadd.f32 %v1136_v18, %v2837_v22  ;;  %v1243_v20 = vmax.f32 %v1135_v39, 0.0 }
 0x26e   : > { %v1140_v21 = vpop.f32.mrf.mxu1 }
 0x26f   : > { %v1244_v27 = vmax.f32 %v1137_v19, 0.0  ;;  %v1289_v23 = vpack.c.bf16 %v1243_v20, %v1241_v40  ;;  %v1141_v31 = vadd.f32 %v1140_v21, %v2840_v24 }
 0x270   : > { %v1142_v52 = vpop.f32.mrf.mxu1 }
 0x271   : > { %v1290_v28 = vpack.c.bf16 %v1244_v27, %v1242_v26  ;;  %v1143_v29 = vadd.f32 %v1142_v52, %v2837_v22  ;;  %v1245_v46 = vmax.f32 %v1141_v31, 0.0 }
 0x272   : > { %v1144_v51 = vpop.f32.mrf.mxu1 }
 0x273   : > { %v1145_v30 = vadd.f32 %v1144_v51, %v2840_v24  ;;  %1623 = vmatprep.mubr.bf16.mxu0 %v1290_v28  ;;  %v1246_v43 = vmax.f32 %v1143_v29, 0.0 }
 0x274   : > { %v1146_v42 = vpop.f32.mrf.mxu1  ;;  %1624 = vmatmul.mubr.bf16.gmra.mxu0 %v1289_v23 }
 0x275   : > { %v1147_v36 = vadd.f32 %v1146_v42, %v2837_v22  ;;  %v1247_v49 = vmax.f32 %v1145_v30, 0.0 }
 0x276   : > { %v1150_v41 = vpop.f32.mrf.mxu1 }
 0x277   : > { %v1248_v45 = vmax.f32 %v1147_v36, 0.0  ;;  %v1291_v47 = vpack.c.bf16 %v1247_v49, %v1245_v46  ;;  %v1151_v50 = vadd.f32 %v1150_v41, %v2840_v24 }
 0x278   : > { %v1152_v12 = vpop.f32.mrf.mxu1 }
 0x279   : > { %v1292_v37 = vpack.c.bf16 %v1248_v45, %v1246_v43  ;;  %v1153_v32 = vadd.f32 %v1152_v12, %v2837_v22  ;;  %v1249_v62 = vmax.f32 %v1151_v50, 0.0 }
 0x27a   : > { %v1154_v10 = vpop.f32.mrf.mxu1 }
 0x27b   : > { %v1155_v48 = vadd.f32 %v1154_v10, %v2840_v24  ;;  %1633 = vmatprep.mubr.bf16.mxu0 %v1292_v37  ;;  %v1250_v59 = vmax.f32 %v1153_v32, 0.0 }
 0x27c   : > { %v1156_v53 = vpop.f32.mrf.mxu1  ;;  %1634 = vmatmul.mubr.bf16.gmra.mxu0 %v1291_v47 }
 0x27d   : > { %v1157_v54 = vadd.f32 %v1156_v53, %v2837_v22  ;;  %v1251_v57 = vmax.f32 %v1155_v48, 0.0 }
 0x27e   : > { %v1160_v58 = vpop.f32.mrf.mxu1 }
 0x27f   : > { %v1252_v60 = vmax.f32 %v1157_v54, 0.0  ;;  %v1293_v25 = vpack.c.bf16 %v1251_v57, %v1249_v62  ;;  %v1161_v44 = vadd.f32 %v1160_v58, %v2840_v24 }
 0x280   : > { %v1162_v61 = vpop.f32.mrf.mxu1 }
 0x281   : > { %v1294_v1 = vpack.c.bf16 %v1252_v60, %v1250_v59  ;;  %v1163_v38 = vadd.f32 %v1162_v61, %v2837_v22  ;;  %v1253_v33 = vmax.f32 %v1161_v44, 0.0 }
 0x282   : > { %v1164_v13 = vpop.f32.mrf.mxu1 }
 0x283   : > { %v1165_v0 = vadd.f32 %v1164_v13, %v2840_v24  ;;  %1643 = vmatprep.mubr.bf16.mxu0 %v1294_v1  ;;  %v1254_v8 = vmax.f32 %v1163_v38, 0.0 }
 0x284   : > { %v1166_v2 = vpop.f32.mrf.mxu1  ;;  %1644 = vmatmul.mubr.bf16.gmra.mxu0 %v1293_v25 }
 0x285   : > { %v1167_v5 = vadd.f32 %v1166_v2, %v2837_v22  ;;  %v1255_v6 = vmax.f32 %v1165_v0, 0.0 }
 0x286   : > { %v1170_v7 = vpop.f32.mrf.mxu1 }
 0x287   : > { %v1256_v9 = vmax.f32 %v1167_v5, 0.0  ;;  %v1295_v11 = vpack.c.bf16 %v1255_v6, %v1253_v33  ;;  %v1171_v3 = vadd.f32 %v1170_v7, %v2840_v24 }
 0x288   : > { %v1172_v55 = vpop.f32.mrf.mxu1 }
 0x289   : > { %v1296_v4 = vpack.c.bf16 %v1256_v9, %v1254_v8  ;;  %v1173_v14 = vadd.f32 %v1172_v55, %v2837_v22  ;;  %v1257_v20 = vmax.f32 %v1171_v3, 0.0  ;;  %v1339_v8 = vld [vmem:[#allocation7 + $0x4] sm:$0x3] }
 0x28a   : > { %v1174_v63 = vpop.f32.mrf.mxu1  ;;  %v2907_v9 = vrot.slane %v1339_v8, %v2701_v35  ;;  %v2910_v33 = vrot.slane %v1339_v8, %v2699_v34 }
 0x28b   : > { %v1175_v56 = vadd.f32 %v1174_v63, %v2840_v24  ;;  %1653 = vmatprep.mubr.bf16.mxu0 %v1296_v4  ;;  %v1258_v18 = vmax.f32 %v1173_v14, 0.0 }
 0x28c   : > { %v1176_v15 = vpop.f32.mrf.mxu1  ;;  %1654 = vmatmul.mubr.bf16.gmra.mxu0 %v1295_v11 }
 0x28d   : > { %v1177_v16 = vadd.f32 %v1176_v15, %v2837_v22  ;;  %v1259_v39 = vmax.f32 %v1175_v56, 0.0 }
 0x28e   : > { %v1180_v17 = vpop.f32.mrf.mxu1 }
 0x28f   : > { %v1260_v19 = vmax.f32 %v1177_v16, 0.0  ;;  %v1297_v27 = vpack.c.bf16 %v1259_v39, %v1257_v20  ;;  %v1181_v23 = vadd.f32 %v1180_v17, %v2840_v24 }
 0x290   : > { %v1182_v21 = vpop.f32.mrf.mxu1 }
 0x291   : > { %v1298_v26 = vpack.c.bf16 %v1260_v19, %v1258_v18  ;;  %v1183_v52 = vadd.f32 %v1182_v21, %v2837_v22  ;;  %v1261_v49 = vmax.f32 %v1181_v23, 0.0 }
 0x292   : > { %v1184_v40 = vpop.f32.mrf.mxu1 }
 0x293   : > { %v1185_v28 = vadd.f32 %v1184_v40, %v2840_v24  ;;  %1663 = vmatprep.mubr.bf16.mxu0 %v1298_v26  ;;  %v1262_v42 = vmax.f32 %v1183_v52, 0.0 }
 0x294   : > { %v1186_v51 = vpop.f32.mrf.mxu1  ;;  %1664 = vmatmul.mubr.bf16.gmra.mxu0 %v1297_v27 }
 0x295   : > { %v1187_v29 = vadd.f32 %v1186_v51, %v2837_v22  ;;  %v1263_v30 = vmax.f32 %v1185_v28, 0.0 }
 0x296   : > { %v1190_v31 = vpop.f32.mrf.mxu1 }
 0x297   : > { %v1264_v36 = vmax.f32 %v1187_v29, 0.0  ;;  %v1299_v45 = vpack.c.bf16 %v1263_v30, %v1261_v49  ;;  %v1191_v47 = vadd.f32 %v1190_v31, %v2840_v24 }
 0x298   : > { %v1192_v41 = vpop.f32.mrf.mxu1 }
 0x299   : > { %v1300_v43 = vpack.c.bf16 %v1264_v36, %v1262_v42  ;;  %v1193_v12 = vadd.f32 %v1192_v41, %v2837_v22  ;;  %v1265_v57 = vmax.f32 %v1191_v47, 0.0 }
 0x29a   : > { %v1194_v46 = vpop.f32.mrf.mxu1 }
 0x29b   : > { %v1195_v37 = vadd.f32 %v1194_v46, %v2840_v24  ;;  %1673 = vmatprep.mubr.bf16.mxu0 %v1300_v43  ;;  %v1266_v53 = vmax.f32 %v1193_v12, 0.0 }
 0x29c   : > { %v1196_v10 = vpop.f32.mrf.mxu1  ;;  %1674 = vmatmul.mubr.bf16.gmra.mxu0 %v1299_v45 }
 0x29d   : > { %v1197_v32 = vadd.f32 %v1196_v10, %v2837_v22  ;;  %v1267_v48 = vmax.f32 %v1195_v37, 0.0 }
 0x29e   : > { %v1200_v50 = vpop.f32.mrf.mxu1 }
 0x29f   : > { %v1268_v54 = vmax.f32 %v1197_v32, 0.0  ;;  %v1301_v60 = vpack.c.bf16 %v1267_v48, %v1265_v57  ;;  %v1201_v25 = vadd.f32 %v1200_v50, %v2840_v24 }
 0x2a0   : > { %v1202_v58 = vpop.f32.mrf.mxu1 }
 0x2a1   : > { %v1302_v59 = vpack.c.bf16 %v1268_v54, %v1266_v53  ;;  %v1203_v61 = vadd.f32 %v1202_v58, %v2837_v22  ;;  %v1269_v5 = vmax.f32 %v1201_v25, 0.0 }
 0x2a2   : > { %v1204_v62 = vpop.f32.mrf.mxu1 }
 0x2a3   : > { %v1205_v1 = vadd.f32 %v1204_v62, %v2840_v24  ;;  %1683 = vmatprep.mubr.bf16.mxu0 %v1302_v59  ;;  %v1270_v44 = vmax.f32 %v1203_v61, 0.0 }
 0x2a4   : > { %v1206_v13 = vpop.f32.mrf.mxu1  ;;  %1684 = vmatmul.mubr.bf16.gmra.mxu0 %v1301_v60 }
 0x2a5   : > { %v1207_v38 = vadd.f32 %v1206_v13, %v2837_v22  ;;  %v1271_v0 = vmax.f32 %v1205_v1, 0.0 }
 0x2a7   : > { %v1272_v2 = vmax.f32 %v1207_v38, 0.0  ;;  %v1303_v7 = vpack.c.bf16 %v1271_v0, %v1269_v5 }
 0x2a9   : > { %v1304_v6 = vpack.c.bf16 %v1272_v2, %v1270_v44 }
 0x2ab   : > { %1693 = vmatprep.mubr.bf16.mxu0 %v1304_v6 }
 0x2ac   : > { %1694 = vmatmul.mubr.bf16.gmra.mxu0 %v1303_v7 }
 0x2f4   : > { %v1545_v24 = vpop.f32.mrf.mxu0 }
 0x2f5   : > { %v1546_v55 = vadd.f32 %v1545_v24, %v2907_v9 }
 0x2f6   : > { %v1547_v22 = vpop.f32.mrf.mxu0 }
 0x2f7   : > { %v1704_v4 = vmax.f32 %v1546_v55, 0.0  ;;  %v1548_v11 = vadd.f32 %v1547_v22, %v2910_v33 }
 0x2f8   : > { %v1549_v63 = vpop.f32.mrf.mxu0 }
 0x2f9   : > { %1768 = vst [vmem:[%s2916_s18] sm:$0xff] %v1704_v4  ;;  %v1705_v35 = vmax.f32 %v1548_v11, 0.0  ;;  %v1550_v34 = vadd.f32 %v1549_v63, %v2907_v9 }
 0x2fa   : > { %v1551_v14 = vpop.f32.mrf.mxu0 }
 0x2fb   : > { %1769 = vst [vmem:[%s2916_s18 + $0x8] sm:$0xff] %v1705_v35  ;;  %v1706_v56 = vmax.f32 %v1550_v34, 0.0  ;;  %v1552_v3 = vadd.f32 %v1551_v14, %v2910_v33 }
 0x2fc   : > { %v1555_v15 = vpop.f32.mrf.mxu0 }
 0x2fd   : > { %1770 = vst [vmem:[%s2916_s18 + $0x10] sm:$0xff] %v1706_v56  ;;  %v1707_v16 = vmax.f32 %v1552_v3, 0.0  ;;  %v1556_v39 = vadd.f32 %v1555_v15, %v2907_v9 }
 0x2fe   : > { %v1557_v17 = vpop.f32.mrf.mxu0 }
 0x2ff   : > { %1771 = vst [vmem:[%s2916_s18 + $0x18] sm:$0xff] %v1707_v16  ;;  %v1708_v18 = vmax.f32 %v1556_v39, 0.0  ;;  %v1558_v19 = vadd.f32 %v1557_v17, %v2910_v33 }
 0x300   : > { %v1559_v20 = vpop.f32.mrf.mxu0 }
 0x301   : > { %1772 = vst [vmem:[%s2916_s18 + $0x20] sm:$0xff] %v1708_v18  ;;  %v1709_v21 = vmax.f32 %v1558_v19, 0.0  ;;  %v1560_v26 = vadd.f32 %v1559_v20, %v2907_v9 }
 0x302   : > { %v1561_v27 = vpop.f32.mrf.mxu0 }
 0x303   : > { %1773 = vst [vmem:[%s2916_s18 + $0x28] sm:$0xff] %v1709_v21  ;;  %v1710_v40 = vmax.f32 %v1560_v26, 0.0  ;;  %v1562_v52 = vadd.f32 %v1561_v27, %v2910_v33 }
 0x304   : > { %v1565_v28 = vpop.f32.mrf.mxu0 }
 0x305   : > { %1774 = vst [vmem:[%s2916_s18 + $0x30] sm:$0xff] %v1710_v40  ;;  %v1711_v23 = vmax.f32 %v1562_v52, 0.0  ;;  %v1566_v51 = vadd.f32 %v1565_v28, %v2907_v9 }
 0x306   : > { %v1567_v29 = vpop.f32.mrf.mxu0 }
 0x307   : > { %1775 = vst [vmem:[%s2916_s18 + $0x38] sm:$0xff] %v1711_v23  ;;  %v1712_v30 = vmax.f32 %v1566_v51, 0.0  ;;  %v1568_v31 = vadd.f32 %v1567_v29, %v2910_v33 }
 0x308   : > { %v1569_v42 = vpop.f32.mrf.mxu0 }
 0x309   : > { %1776 = vst [vmem:[%s2916_s18 + $0x40] sm:$0xff] %v1712_v30  ;;  %v1713_v36 = vmax.f32 %v1568_v31, 0.0  ;;  %v1570_v49 = vadd.f32 %v1569_v42, %v2907_v9 }
 0x30a   : > { %v1571_v41 = vpop.f32.mrf.mxu0 }
 0x30b   : > { %1777 = vst [vmem:[%s2916_s18 + $0x48] sm:$0xff] %v1713_v36  ;;  %v1714_v43 = vmax.f32 %v1570_v49, 0.0  ;;  %v1572_v45 = vadd.f32 %v1571_v41, %v2910_v33 }
 0x30c   : > { %v1575_v46 = vpop.f32.mrf.mxu0 }
 0x30d   : > { %1778 = vst [vmem:[%s2916_s18 + $0x50] sm:$0xff] %v1714_v43  ;;  %v1715_v12 = vmax.f32 %v1572_v45, 0.0  ;;  %v1576_v37 = vadd.f32 %v1575_v46, %v2907_v9 }
 0x30e   : > { %v1577_v47 = vpop.f32.mrf.mxu0 }
 0x30f   : > { %1779 = vst [vmem:[%s2916_s18 + $0x58] sm:$0xff] %v1715_v12  ;;  %v1716_v10 = vmax.f32 %v1576_v37, 0.0  ;;  %v1578_v32 = vadd.f32 %v1577_v47, %v2910_v33 }
 0x310   : > { %v1579_v48 = vpop.f32.mrf.mxu0 }
 0x311   : > { %1780 = vst [vmem:[%s2916_s18 + $0x60] sm:$0xff] %v1716_v10  ;;  %v1717_v50 = vmax.f32 %v1578_v32, 0.0  ;;  %v1580_v53 = vadd.f32 %v1579_v48, %v2907_v9 }
 0x312   : > { %v1581_v54 = vpop.f32.mrf.mxu0 }
 0x313   : > { %1781 = vst [vmem:[%s2916_s18 + $0x68] sm:$0xff] %v1717_v50  ;;  %v1718_v57 = vmax.f32 %v1580_v53, 0.0  ;;  %v1582_v58 = vadd.f32 %v1581_v54, %v2910_v33 }
 0x314   : > { %v1585_v59 = vpop.f32.mrf.mxu0 }
 0x315   : > { %1782 = vst [vmem:[%s2916_s18 + $0x70] sm:$0xff] %v1718_v57  ;;  %v1719_v60 = vmax.f32 %v1582_v58, 0.0  ;;  %v1586_v62 = vadd.f32 %v1585_v59, %v2907_v9 }
 0x316   : > { %v1587_v61 = vpop.f32.mrf.mxu0 }
 0x317   : > { %1783 = vst [vmem:[%s2916_s18 + $0x78] sm:$0xff] %v1719_v60  ;;  %v1720_v1 = vmax.f32 %v1586_v62, 0.0  ;;  %v1588_v25 = vadd.f32 %v1587_v61, %v2910_v33 }
 0x318   : > { %v1589_v13 = vpop.f32.mrf.mxu0 }
 0x319   : > { %1784 = vst [vmem:[%s2916_s18 + $0x80] sm:$0xff] %v1720_v1  ;;  %v1721_v38 = vmax.f32 %v1588_v25, 0.0  ;;  %v1590_v0 = vadd.f32 %v1589_v13, %v2907_v9 }
 0x31a   : > { %v1591_v44 = vpop.f32.mrf.mxu0 }
 0x31b   : > { %1785 = vst [vmem:[%s2916_s18 + $0x88] sm:$0xff] %v1721_v38  ;;  %v1722_v2 = vmax.f32 %v1590_v0, 0.0  ;;  %v1592_v5 = vadd.f32 %v1591_v44, %v2910_v33 }
 0x31c   : > { %v1595_v6 = vpop.f32.mrf.mxu0 }
 0x31d   : > { %1786 = vst [vmem:[%s2916_s18 + $0x90] sm:$0xff] %v1722_v2  ;;  %v1723_v7 = vmax.f32 %v1592_v5, 0.0  ;;  %v1596_v8 = vadd.f32 %v1595_v6, %v2907_v9 }
 0x31e   : > { %v1597_v24 = vpop.f32.mrf.mxu0 }
 0x31f   : > { %1787 = vst [vmem:[%s2916_s18 + $0x98] sm:$0xff] %v1723_v7  ;;  %v1724_v55 = vmax.f32 %v1596_v8, 0.0  ;;  %v1598_v22 = vadd.f32 %v1597_v24, %v2910_v33 }
 0x320   : > { %v1599_v4 = vpop.f32.mrf.mxu0 }
 0x321   : > { %1788 = vst [vmem:[%s2916_s18 + $0xa0] sm:$0xff] %v1724_v55  ;;  %v1725_v11 = vmax.f32 %v1598_v22, 0.0  ;;  %v1600_v63 = vadd.f32 %v1599_v4, %v2907_v9 }
 0x322   : > { %v1601_v35 = vpop.f32.mrf.mxu0 }
 0x323   : > { %1789 = vst [vmem:[%s2916_s18 + $0xa8] sm:$0xff] %v1725_v11  ;;  %v1726_v34 = vmax.f32 %v1600_v63, 0.0  ;;  %v1602_v14 = vadd.f32 %v1601_v35, %v2910_v33 }
 0x324   : > { %v1605_v56 = vpop.f32.mrf.mxu0 }
 0x325   : > { %1790 = vst [vmem:[%s2916_s18 + $0xb0] sm:$0xff] %v1726_v34  ;;  %v1727_v3 = vmax.f32 %v1602_v14, 0.0  ;;  %v1606_v15 = vadd.f32 %v1605_v56, %v2907_v9 }
 0x326   : > { %v1607_v16 = vpop.f32.mrf.mxu0 }
 0x327   : > { %1791 = vst [vmem:[%s2916_s18 + $0xb8] sm:$0xff] %v1727_v3  ;;  %v1728_v39 = vmax.f32 %v1606_v15, 0.0  ;;  %v1608_v17 = vadd.f32 %v1607_v16, %v2910_v33 }
 0x328   : > { %v1609_v18 = vpop.f32.mrf.mxu0 }
 0x329   : > { %1792 = vst [vmem:[%s2916_s18 + $0xc0] sm:$0xff] %v1728_v39  ;;  %v1729_v19 = vmax.f32 %v1608_v17, 0.0  ;;  %v1610_v20 = vadd.f32 %v1609_v18, %v2907_v9 }
 0x32a   : > { %v1611_v21 = vpop.f32.mrf.mxu0 }
 0x32b   : > { %1793 = vst [vmem:[%s2916_s18 + $0xc8] sm:$0xff] %v1729_v19  ;;  %v1730_v26 = vmax.f32 %v1610_v20, 0.0  ;;  %v1612_v27 = vadd.f32 %v1611_v21, %v2910_v33 }
 0x32c   : > { %v1615_v40 = vpop.f32.mrf.mxu0 }
 0x32d   : > { %1794 = vst [vmem:[%s2916_s18 + $0xd0] sm:$0xff] %v1730_v26  ;;  %v1731_v52 = vmax.f32 %v1612_v27, 0.0  ;;  %v1616_v28 = vadd.f32 %v1615_v40, %v2907_v9 }
 0x32e   : > { %v1617_v23 = vpop.f32.mrf.mxu0 }
 0x32f   : > { %1795 = vst [vmem:[%s2916_s18 + $0xd8] sm:$0xff] %v1731_v52  ;;  %v1732_v51 = vmax.f32 %v1616_v28, 0.0  ;;  %v1618_v29 = vadd.f32 %v1617_v23, %v2910_v33 }
 0x330   : > { %v1619_v30 = vpop.f32.mrf.mxu0 }
 0x331   : > { %1796 = vst [vmem:[%s2916_s18 + $0xe0] sm:$0xff] %v1732_v51  ;;  %v1733_v31 = vmax.f32 %v1618_v29, 0.0  ;;  %v1620_v42 = vadd.f32 %v1619_v30, %v2907_v9 }
 0x332   : > { %v1621_v36 = vpop.f32.mrf.mxu0 }
 0x333   : > { %1797 = vst [vmem:[%s2916_s18 + $0xe8] sm:$0xff] %v1733_v31  ;;  %v1734_v49 = vmax.f32 %v1620_v42, 0.0  ;;  %v1622_v41 = vadd.f32 %v1621_v36, %v2910_v33 }
 0x334   : > { %v1625_v43 = vpop.f32.mrf.mxu0 }
 0x335   : > { %1798 = vst [vmem:[%s2916_s18 + $0xf0] sm:$0xff] %v1734_v49  ;;  %v1735_v45 = vmax.f32 %v1622_v41, 0.0  ;;  %v1626_v46 = vadd.f32 %v1625_v43, %v2907_v9 }
 0x336   : > { %v1627_v12 = vpop.f32.mrf.mxu0 }
 0x337   : > { %1799 = vst [vmem:[%s2916_s18 + $0xf8] sm:$0xff] %v1735_v45  ;;  %v1736_v37 = vmax.f32 %v1626_v46, 0.0  ;;  %v1628_v47 = vadd.f32 %v1627_v12, %v2910_v33 }
 0x338   : > { %v1629_v10 = vpop.f32.mrf.mxu0 }
 0x339   : > { %1800 = vst [vmem:[%s2916_s18 + $0x100] sm:$0xff] %v1736_v37  ;;  %v1737_v32 = vmax.f32 %v1628_v47, 0.0  ;;  %v1630_v48 = vadd.f32 %v1629_v10, %v2907_v9 }
 0x33a   : > { %v1631_v50 = vpop.f32.mrf.mxu0 }
 0x33b   : > { %1801 = vst [vmem:[%s2916_s18 + $0x108] sm:$0xff] %v1737_v32  ;;  %v1738_v53 = vmax.f32 %v1630_v48, 0.0  ;;  %v1632_v54 = vadd.f32 %v1631_v50, %v2910_v33 }
 0x33c   : > { %v1635_v57 = vpop.f32.mrf.mxu0 }
 0x33d   : > { %1802 = vst [vmem:[%s2916_s18 + $0x110] sm:$0xff] %v1738_v53  ;;  %v1739_v58 = vmax.f32 %v1632_v54, 0.0  ;;  %v1636_v59 = vadd.f32 %v1635_v57, %v2907_v9 }
 0x33e   : > { %v1637_v60 = vpop.f32.mrf.mxu0 }
 0x33f   : > { %1803 = vst [vmem:[%s2916_s18 + $0x118] sm:$0xff] %v1739_v58  ;;  %v1740_v62 = vmax.f32 %v1636_v59, 0.0  ;;  %v1638_v61 = vadd.f32 %v1637_v60, %v2910_v33 }
 0x340   : > { %v1639_v1 = vpop.f32.mrf.mxu0 }
 0x341   : > { %1804 = vst [vmem:[%s2916_s18 + $0x120] sm:$0xff] %v1740_v62  ;;  %v1741_v25 = vmax.f32 %v1638_v61, 0.0  ;;  %v1640_v13 = vadd.f32 %v1639_v1, %v2907_v9 }
 0x342   : > { %v1641_v38 = vpop.f32.mrf.mxu0 }
 0x343   : > { %1805 = vst [vmem:[%s2916_s18 + $0x128] sm:$0xff] %v1741_v25  ;;  %v1742_v0 = vmax.f32 %v1640_v13, 0.0  ;;  %v1642_v44 = vadd.f32 %v1641_v38, %v2910_v33 }
 0x344   : > { %v1645_v2 = vpop.f32.mrf.mxu0 }
 0x345   : > { %1806 = vst [vmem:[%s2916_s18 + $0x130] sm:$0xff] %v1742_v0  ;;  %v1743_v5 = vmax.f32 %v1642_v44, 0.0  ;;  %v1646_v6 = vadd.f32 %v1645_v2, %v2907_v9 }
 0x346   : > { %v1647_v7 = vpop.f32.mrf.mxu0 }
 0x347   : > { %1807 = vst [vmem:[%s2916_s18 + $0x138] sm:$0xff] %v1743_v5  ;;  %v1744_v8 = vmax.f32 %v1646_v6, 0.0  ;;  %v1648_v24 = vadd.f32 %v1647_v7, %v2910_v33 }
 0x348   : > { %v1649_v55 = vpop.f32.mrf.mxu0 }
 0x349   : > { %1808 = vst [vmem:[%s2916_s18 + $0x140] sm:$0xff] %v1744_v8  ;;  %v1745_v22 = vmax.f32 %v1648_v24, 0.0  ;;  %v1650_v4 = vadd.f32 %v1649_v55, %v2907_v9 }
 0x34a   : > { %v1651_v11 = vpop.f32.mrf.mxu0 }
 0x34b   : > { %1809 = vst [vmem:[%s2916_s18 + $0x148] sm:$0xff] %v1745_v22  ;;  %v1746_v63 = vmax.f32 %v1650_v4, 0.0  ;;  %v1652_v35 = vadd.f32 %v1651_v11, %v2910_v33 }
 0x34c   : > { %v1655_v34 = vpop.f32.mrf.mxu0 }
 0x34d   : > { %1810 = vst [vmem:[%s2916_s18 + $0x150] sm:$0xff] %v1746_v63  ;;  %v1747_v14 = vmax.f32 %v1652_v35, 0.0  ;;  %v1656_v56 = vadd.f32 %v1655_v34, %v2907_v9 }
 0x34e   : > { %v1657_v3 = vpop.f32.mrf.mxu0 }
 0x34f   : > { %1811 = vst [vmem:[%s2916_s18 + $0x158] sm:$0xff] %v1747_v14  ;;  %v1748_v15 = vmax.f32 %v1656_v56, 0.0  ;;  %v1658_v16 = vadd.f32 %v1657_v3, %v2910_v33 }
 0x350   : > { %v1659_v39 = vpop.f32.mrf.mxu0 }
 0x351   : > { %1812 = vst [vmem:[%s2916_s18 + $0x160] sm:$0xff] %v1748_v15  ;;  %v1749_v17 = vmax.f32 %v1658_v16, 0.0  ;;  %v1660_v18 = vadd.f32 %v1659_v39, %v2907_v9 }
 0x352   : > { %v1661_v19 = vpop.f32.mrf.mxu0 }
 0x353   : > { %1813 = vst [vmem:[%s2916_s18 + $0x168] sm:$0xff] %v1749_v17  ;;  %v1750_v20 = vmax.f32 %v1660_v18, 0.0  ;;  %v1662_v21 = vadd.f32 %v1661_v19, %v2910_v33 }
 0x354   : > { %v1665_v26 = vpop.f32.mrf.mxu0 }
 0x355   : > { %1814 = vst [vmem:[%s2916_s18 + $0x170] sm:$0xff] %v1750_v20  ;;  %v1751_v27 = vmax.f32 %v1662_v21, 0.0  ;;  %v1666_v40 = vadd.f32 %v1665_v26, %v2907_v9 }
 0x356   : > { %v1667_v52 = vpop.f32.mrf.mxu0 }
 0x357   : > { %1815 = vst [vmem:[%s2916_s18 + $0x178] sm:$0xff] %v1751_v27  ;;  %v1752_v28 = vmax.f32 %v1666_v40, 0.0  ;;  %v1668_v23 = vadd.f32 %v1667_v52, %v2910_v33 }
 0x358   : > { %v1669_v51 = vpop.f32.mrf.mxu0 }
 0x359   : > { %1816 = vst [vmem:[%s2916_s18 + $0x180] sm:$0xff] %v1752_v28  ;;  %v1753_v29 = vmax.f32 %v1668_v23, 0.0  ;;  %v1670_v30 = vadd.f32 %v1669_v51, %v2907_v9 }
 0x35a   : > { %v1671_v31 = vpop.f32.mrf.mxu0 }
 0x35b   : > { %1817 = vst [vmem:[%s2916_s18 + $0x188] sm:$0xff] %v1753_v29  ;;  %v1754_v42 = vmax.f32 %v1670_v30, 0.0  ;;  %v1672_v36 = vadd.f32 %v1671_v31, %v2910_v33 }
 0x35c   : > { %v1675_v49 = vpop.f32.mrf.mxu0 }
 0x35d   : > { %1818 = vst [vmem:[%s2916_s18 + $0x190] sm:$0xff] %v1754_v42  ;;  %v1755_v41 = vmax.f32 %v1672_v36, 0.0  ;;  %v1676_v43 = vadd.f32 %v1675_v49, %v2907_v9 }
 0x35e   : > { %v1677_v45 = vpop.f32.mrf.mxu0 }
 0x35f   : > { %1819 = vst [vmem:[%s2916_s18 + $0x198] sm:$0xff] %v1755_v41  ;;  %v1756_v46 = vmax.f32 %v1676_v43, 0.0  ;;  %v1678_v12 = vadd.f32 %v1677_v45, %v2910_v33 }
 0x360   : > { %v1679_v37 = vpop.f32.mrf.mxu0 }
 0x361   : > { %1820 = vst [vmem:[%s2916_s18 + $0x1a0] sm:$0xff] %v1756_v46  ;;  %v1757_v47 = vmax.f32 %v1678_v12, 0.0  ;;  %v1680_v10 = vadd.f32 %v1679_v37, %v2907_v9 }
 0x362   : > { %v1681_v32 = vpop.f32.mrf.mxu0 }
 0x363   : > { %1821 = vst [vmem:[%s2916_s18 + $0x1a8] sm:$0xff] %v1757_v47  ;;  %v1758_v48 = vmax.f32 %v1680_v10, 0.0  ;;  %v1682_v50 = vadd.f32 %v1681_v32, %v2910_v33 }
 0x364   : > { %v1685_v53 = vpop.f32.mrf.mxu0 }
 0x365   : > { %1822 = vst [vmem:[%s2916_s18 + $0x1b0] sm:$0xff] %v1758_v48  ;;  %v1759_v54 = vmax.f32 %v1682_v50, 0.0  ;;  %v1686_v57 = vadd.f32 %v1685_v53, %v2907_v9 }
 0x366   : > { %v1687_v58 = vpop.f32.mrf.mxu0 }
 0x367   : > { %1823 = vst [vmem:[%s2916_s18 + $0x1b8] sm:$0xff] %v1759_v54  ;;  %v1760_v59 = vmax.f32 %v1686_v57, 0.0  ;;  %v1688_v60 = vadd.f32 %v1687_v58, %v2910_v33 }
 0x368   : > { %v1689_v62 = vpop.f32.mrf.mxu0 }
 0x369   : > { %1824 = vst [vmem:[%s2916_s18 + $0x1c0] sm:$0xff] %v1760_v59  ;;  %v1761_v61 = vmax.f32 %v1688_v60, 0.0  ;;  %v1690_v1 = vadd.f32 %v1689_v62, %v2907_v9 }
 0x36a   : > { %v1691_v25 = vpop.f32.mrf.mxu0 }
 0x36b   : > { %1825 = vst [vmem:[%s2916_s18 + $0x1c8] sm:$0xff] %v1761_v61  ;;  %v1762_v13 = vmax.f32 %v1690_v1, 0.0  ;;  %v1692_v38 = vadd.f32 %v1691_v25, %v2910_v33 }
 0x36c   : > { %v1695_v0 = vpop.f32.mrf.mxu0 }
 0x36d   : > { %1826 = vst [vmem:[%s2916_s18 + $0x1d0] sm:$0xff] %v1762_v13  ;;  %v1763_v44 = vmax.f32 %v1692_v38, 0.0  ;;  %v1696_v2 = vadd.f32 %v1695_v0, %v2907_v9 }
 0x36e   : > { %v1697_v5 = vpop.f32.mrf.mxu0 }
 0x36f   : > { %1827 = vst [vmem:[%s2916_s18 + $0x1d8] sm:$0xff] %v1763_v44  ;;  %v1764_v6 = vmax.f32 %v1696_v2, 0.0  ;;  %v1698_v7 = vadd.f32 %v1697_v5, %v2910_v33 }
 0x370   : > { %v1699_v8 = vpop.f32.mrf.mxu0 }
 0x371   : > { %1828 = vst [vmem:[%s2916_s18 + $0x1e0] sm:$0xff] %v1764_v6  ;;  %v1765_v24 = vmax.f32 %v1698_v7, 0.0  ;;  %v1700_v55 = vadd.f32 %v1699_v8, %v2907_v9 }
 0x372   : > { %v1701_v22 = vpop.f32.mrf.mxu0 }
 0x373   : > { %1829 = vst [vmem:[%s2916_s18 + $0x1e8] sm:$0xff] %v1765_v24  ;;  %v1766_v4 = vmax.f32 %v1700_v55, 0.0  ;;  %v1702_v11 = vadd.f32 %v1701_v22, %v2910_v33 }
 0x375   : > { %1830 = vst [vmem:[%s2916_s18 + $0x1f0] sm:$0xff] %v1766_v4  ;;  %v1767_v63 = vmax.f32 %v1702_v11, 0.0 }
 0x377   : > { %1831 = vst [vmem:[%s2916_s18 + $0x1f8] sm:$0xff] %v1767_v63 }
 0x378   : > { %2403 = shalt.err (!%p2400_p9)
}
 0x379   : > { %s2404_s24 = scalar_lea.hbm %s3047_s4, 8192  ;;  %s2408_s28 = scalar_lea.hbm %s3097_s3, 16384 }
 0x37a   : > { %p2405_p13 = scmp.ne.s32.totalorder %s3047_s4, %s2404_s24  ;;  %p2409_p4 = scmp.lt.s32.totalorder %s3047_s4, %s3097_s3 }
 0x37b   : > { %p2410_p8 = scmp.lt.s32.totalorder %s2408_s28, %s2404_s24 }
 0x37c   : > { %p2406_p5 = pnand %p2405_p13, %p3113_p10 }
 0x37d   : > { %p2411_p7 = por %p2410_p8, %p2409_p4 }
 0x37e   : > { %p2407_p0 = pneg %p2406_p5 }
 0x380   : > { %p2412_p11 = pnand %p2411_p7, %p2407_p0 }
 0x382   : > { %2415 = shalt.err (!%p2412_p11)
}
 0x383   : > { %s2470_s8 = smov 256   ;;  %s2471_s18 = smov 16  }
 0x384   : > { %2101 = dma.vmem_to_hbm [thread:$0]  (%p3113_p10), %s3049_s27, 8192, %s3047_s4, %s1833_s16, %s2470_s8, %s2470_s8, %s2471_s18  }
 0x385 PF: > { %s1862_s20 = sand.u32 1, %s2446_s12   ;;  %p3114_p1 = scmp.ne.s32.totalorder %s3103_s19, 0 }
 0x386   : > { %p3115_p2 = scmp.ge.s32.totalorder %s2458_s15, 2  ;;  %s1863_s29 = scalar_lea.sflag [#allocation4], %s1862_s20 }
 0x388   : > { %p2115_p6 = pnand %p3115_p2, %p3114_p1 }
 0x38a   : > { %p2116_p12 = pneg %p2115_p6 }
 0x38c   : > { %2441 = dma.done.wait (%p2116_p12), %s1863_s29, 8192  }
 0x38d   : > { %2443 = vsyncadd (%p2116_p12), %s1863_s29, 4294959104  ;;  %p17_p3 = scmp.ge.s32.totalorder %s2564_s9, 4   ;;  %s3116_s12 = smov %s2450_s13 }
 0x38e   : > { %s3117_s13 = smov %s2454_s14  ;;  %s3118_s14 = smov %s2573_s17 }
 0x38f   : > { %s3119_s15 = smov %s2564_s9  ;;  %19 = sbr.rel (!%p17_p3) target bundleno = 6 (0x6), region = 89 }
 0x394   :  { %1868 = vsyncpa [#allocation3], 1 }
 0x395   :  { %1870 = vsyncpa [#allocation3 + $0x1], 1 }
 0x396   :  { %1871 = vsyncpa [#allocation6], 1 }
 0x397   :  { %1872 = vsyncpa [#allocation4], 1 }
 0x398   :  { %1874 = vsyncpa [#allocation4 + $0x1], 1 }

</bundles_post_ra>
